<compile_context>
chip_gen: v7x
topology: tpu7x:2x2x1
jax: 0.10.0
libtpu: 0.0.40
codegen_flags: <defaults>
</compile_context>

<pallas_src>
import functools

import jax
import jax.numpy as jnp
from jax.experimental import pallas as pl
from jax.experimental.pallas import tpu as pltpu

NEG_SLOPE = 0.01  # F.leaky_relu default negative_slope


def _round_up(x, m):
    return ((x + m - 1) // m) * m


def _pick_tile(dim, cap, quantum):
    """Largest tile <= cap that is a multiple of `quantum` and divides `dim`.
    `dim` must itself be a multiple of `quantum`."""
    t = min(cap, dim)
    t = max((t // quantum) * quantum, quantum)
    while dim % t:
        t -= quantum
    return t


def _pad2(x, rows, cols):
    r, c = x.shape
    return jnp.pad(x, ((0, rows - r), (0, cols - c)))


# -----------------------------------------------------------------------------
# Tiled matmul (+ bias + LeakyReLU) kernel:  O = act(X @ W + b)
#   f32 accumulator in VMEM scratch; bias/activation only in the k==last
#   epilogue so the inner loop is a pure MXU push.
# -----------------------------------------------------------------------------
def _matmul_bias_act_kernel(x_ref, w_ref, b_ref, o_ref, acc_ref, *, apply_act):
    @pl.when(pl.program_id(2) == 0)
    def _():
        acc_ref[...] = jnp.zeros_like(acc_ref)

    acc_ref[...] += jnp.dot(x_ref[...], w_ref[...],
                            preferred_element_type=jnp.float32)

    @pl.when(pl.program_id(2) == pl.num_programs(2) - 1)
    def _():
        out = acc_ref[...] + b_ref[...]
        if apply_act:
            out = jnp.where(out > 0, out, NEG_SLOPE * out)
        o_ref[...] = out.astype(o_ref.dtype)


def pallas_matmul_bias_act(x, w, b=None, *, apply_act=False,
                           out_dtype=jnp.float32,
                           tm_cap=256, tn_cap=512, tk_cap=1024):
    """x: [M, K] bf16, w: [K, N] bf16, b: [1, N] f32 (or None).
    Caller pre-pads: M % 8 == 0, K % 128 == 0, N % 128 == 0."""
    m, k = x.shape
    k2, n = w.shape
    assert k == k2
    if b is None:
        b = jnp.zeros((1, n), jnp.float32)
    tm = _pick_tile(m, tm_cap, 8)
    tn = _pick_tile(n, tn_cap, 128)
    tk = _pick_tile(k, tk_cap, 128)
    kernel = functools.partial(_matmul_bias_act_kernel, apply_act=apply_act)
    return pl.pallas_call(
        kernel,
        out_shape=jax.ShapeDtypeStruct((m, n), out_dtype),
        grid_spec=pltpu.PrefetchScalarGridSpec(
            num_scalar_prefetch=0,
            grid=(m // tm, n // tn, k // tk),
            in_specs=[
                pl.BlockSpec((tm, tk), lambda i, j, kk: (i, kk)),   # X tile
                pl.BlockSpec((tk, tn), lambda i, j, kk: (kk, j)),   # W tile
                pl.BlockSpec((1, tn), lambda i, j, kk: (0, j)),     # bias row
            ],
            out_specs=pl.BlockSpec((tm, tn), lambda i, j, kk: (i, j)),
            scratch_shapes=[pltpu.VMEM((tm, tn), jnp.float32)],
        ),
        compiler_params=pltpu.CompilerParams(
            dimension_semantics=("parallel", "parallel", "arbitrary")),
    )(x, w, b)


# -----------------------------------------------------------------------------
# Fully fused small-graph kernel: all 5 GCN layers in one pallas_call, with
# A_hat / weights / activations resident in VMEM the whole time.
# -----------------------------------------------------------------------------
def _fused_gae_kernel(a_ref, x_ref, *refs, n_layers):
    w_refs = refs[:n_layers]
    b_refs = refs[n_layers:2 * n_layers]
    o_ref = refs[2 * n_layers]

    a = a_ref[...]                      # bf16 [Np, Np]
    h = x_ref[...]                      # bf16 [Np, F0p]
    for li in range(n_layers):
        xw = jnp.dot(h, w_refs[li][...],
                     preferred_element_type=jnp.float32)
        out = jnp.dot(a, xw.astype(jnp.bfloat16),
                      preferred_element_type=jnp.float32) + b_refs[li][...]
        if li < n_layers - 1:
            out = jnp.where(out > 0, out, NEG_SLOPE * out)
            h = out.astype(jnp.bfloat16)
        else:
            o_ref[...] = out.astype(o_ref.dtype)


def fused_gae_forward(a_bf16, x_bf16, ws_bf16, bs_f32):
    n_layers = len(ws_bf16)
    np_ = a_bf16.shape[0]
    f_out = ws_bf16[-1].shape[1]
    kernel = functools.partial(_fused_gae_kernel, n_layers=n_layers)
    in_specs = ([pl.BlockSpec(a_bf16.shape, lambda i: (0, 0)),
                 pl.BlockSpec(x_bf16.shape, lambda i: (0, 0))]
                + [pl.BlockSpec(w.shape, lambda i: (0, 0)) for w in ws_bf16]
                + [pl.BlockSpec(b.shape, lambda i: (0, 0)) for b in bs_f32])
    return pl.pallas_call(
        kernel,
        out_shape=jax.ShapeDtypeStruct((np_, f_out), jnp.float32),
        grid=(1,),
        in_specs=in_specs,
        out_specs=pl.BlockSpec((np_, f_out), lambda i: (0, 0)),
        compiler_params=pltpu.CompilerParams(
            dimension_semantics=("arbitrary",)),
    )(a_bf16, x_bf16, *ws_bf16, *bs_f32)


# -----------------------------------------------------------------------------
# Plain-JAX glue: symmetric GCN normalization (PyG gcn_norm w/ self-loops),
# built directly at padded size (pad rows/cols stay exactly zero).
# -----------------------------------------------------------------------------
def build_normalized_adjacency(edge_index, edge_weight, num_nodes,
                               padded_nodes=None):
    np_ = padded_nodes if padded_nodes is not None else num_nodes
    src = edge_index[0]
    tgt = edge_index[1]
    loop = jnp.arange(num_nodes, dtype=edge_index.dtype)
    src = jnp.concatenate([src, loop])
    tgt = jnp.concatenate([tgt, loop])
    w = jnp.concatenate([edge_weight,
                         jnp.ones((num_nodes,), edge_weight.dtype)])
    # dense A[target, source] += w   (aggregation at target node)
    a = jnp.zeros((np_, np_), jnp.float32).at[tgt, src].add(w)
    deg = a.sum(axis=1)
    dinv = jnp.where(deg > 0, jax.lax.rsqrt(deg), 0.0)
    return dinv[:, None] * a * dinv[None, :]


# -----------------------------------------------------------------------------
# GAEEncoder: 5 stacked GCNConv layers with LeakyReLU between them.
# -----------------------------------------------------------------------------
def init_gae_encoder_params(key, n_node_atts, emb_dim):
    dims = [n_node_atts, 2 * emb_dim, 4 * emb_dim, 4 * emb_dim, 2 * emb_dim,
            emb_dim]
    params = []
    for li in range(5):
        key, kw = jax.random.split(key)
        f_in, f_out = dims[li], dims[li + 1]
        scale = jnp.sqrt(6.0 / (f_in + f_out)).astype(jnp.float32)
        w = jax.random.uniform(kw, (f_in, f_out), jnp.float32, -scale, scale)
        b = jnp.zeros((f_out,), jnp.float32)
        params.append((w, b))
    return params


def gae_encoder_forward(params, x, edge_index, edge_weight, *,
                        force_tiled=False):
    n, f0 = x.shape
    n_layers = len(params)
    dims = [f0] + [w.shape[1] for (w, _) in params]
    dims_p = [_round_up(d, 128) for d in dims]      # lane-dense feature dims

    # ---- choose path: fully fused (small graphs) vs tiled --------------------
    np_fused = _round_up(n, 128)
    fused_bytes = 2 * np_fused * np_fused                        # A_hat bf16
    fused_bytes += 2 * np_fused * dims_p[0]                      # x bf16
    fused_bytes += sum(2 * dims_p[i] * dims_p[i + 1] + 4 * dims_p[i + 1]
                       for i in range(n_layers))                 # W, b
    fused_bytes += 3 * 4 * np_fused * max(dims_p)                # live acts
    use_fused = (not force_tiled) and fused_bytes < 4 * 1024 * 1024

    np_ = np_fused if use_fused else _round_up(n, 256)

    a_bf16 = build_normalized_adjacency(
        edge_index, edge_weight, n, np_).astype(jnp.bfloat16)
    x_p = _pad2(x, np_, dims_p[0]).astype(jnp.bfloat16)
    ws_p = [_pad2(w, dims_p[i], dims_p[i + 1]).astype(jnp.bfloat16)
            for i, (w, _) in enumerate(params)]
    bs_p = [_pad2(b.reshape(1, -1), 1, dims_p[i + 1]).astype(jnp.float32)
            for i, (_, b) in enumerate(params)]

    if use_fused:
        out = fused_gae_forward(a_bf16, x_p, ws_p, bs_p)
    else:
        h = x_p
        out = h
        for li in range(n_layers):
            is_last = li == n_layers - 1
            # cheap feature transform, hoisted out of the big tiled matmul
            hw = pallas_matmul_bias_act(h, ws_p[li], None, apply_act=False,
                                        out_dtype=jnp.bfloat16)
            # dominant cost: tiled A_hat @ H + b (+ LeakyReLU) with f32 acc
            out = pallas_matmul_bias_act(
                a_bf16, hw, bs_p[li], apply_act=not is_last,
                out_dtype=jnp.float32 if is_last else jnp.bfloat16)
            h = out
    return out[:n, :dims[-1]]


def gae_encoder_reference(params, x, edge_index, edge_weight):
    a = build_normalized_adjacency(edge_index, edge_weight, x.shape[0])
    h = x
    for li, (w, b) in enumerate(params):
        h = a @ (h @ w) + b[None, :]
        if li < len(params) - 1:
            h = jnp.where(h > 0, h, NEG_SLOPE * h)
    return h


if __name__ == "__main__":
    key = jax.random.PRNGKey(0)

    N_NODES = 16
    N_NODE_ATTS = 8
    EMB_DIM = 32
    N_EDGES = 32

    k_x, k_src, k_tgt, k_w, k_p = jax.random.split(key, 5)
    x = jax.random.normal(k_x, (N_NODES, N_NODE_ATTS), jnp.float32)
    src = jax.random.randint(k_src, (N_EDGES,), 0, N_NODES, jnp.int32)
    tgt = jax.random.randint(k_tgt, (N_EDGES,), 0, N_NODES, jnp.int32)
    edge_index = jnp.stack([src, tgt], axis=0)          # [2, E]
    edge_weight = jax.random.uniform(k_w, (N_EDGES,), jnp.float32, 0.1, 1.0)

    params = init_gae_encoder_params(k_p, N_NODE_ATTS, EMB_DIM)

    fwd = jax.jit(gae_encoder_forward, static_argnames=("force_tiled",))

    # small-graph path: single fused VMEM-resident kernel
    out_fused = jax.block_until_ready(fwd(params, x, edge_index, edge_weight))
    # large-graph code path (tiled accumulator kernels), forced for coverage
    out_tiled = jax.block_until_ready(
        fwd(params, x, edge_index, edge_weight, force_tiled=True))
    ref = jax.block_until_ready(
        gae_encoder_reference(params, x, edge_index, edge_weight))

    assert out_fused.shape == (N_NODES, EMB_DIM), out_fused.shape
    assert out_tiled.shape == (N_NODES, EMB_DIM), out_tiled.shape
    scale = jnp.maximum(jnp.max(jnp.abs(ref)), 1e-3)
    err_f = float(jnp.max(jnp.abs(out_fused - ref)) / scale)
    err_t = float(jnp.max(jnp.abs(out_tiled - ref)) / scale)
    assert err_f < 0.1 and err_t < 0.1, (err_f, err_t)
    print("KERNEL_OK")
</pallas_src>

<mosaic_0001>
module attributes {stable_mosaic.version = 11 : i64} {
  func.func private @main(%arg0: i32) attributes {dimension_semantics = [#tpu.dimension_semantics<core_parallel>], iteration_bounds = array<i64: 2>, tpu.core_type = #tpu.core_type<sc_scalar_subcore>, window_params = []} {
    return
  }
}

module attributes {stable_mosaic.version = 11 : i64} {
  func.func private @main(%arg0: i32) attributes {dimension_semantics = [#tpu.dimension_semantics<core_parallel>], iteration_bounds = array<i64: 2>, tpu.core_type = #tpu.core_type<sc_scalar_subcore>, window_params = []} {
    return
  }
}

module attributes {stable_mosaic.version = 11 : i64} {
  func.func @_fused_gae_kernel(%arg0: i32, %arg1: memref<128x128xbf16, #tpu.memory_space<vmem>>, %arg2: memref<128x128xbf16, #tpu.memory_space<vmem>>, %arg3: memref<128x128xbf16, #tpu.memory_space<vmem>>, %arg4: memref<128x128xbf16, #tpu.memory_space<vmem>>, %arg5: memref<128x128xbf16, #tpu.memory_space<vmem>>, %arg6: memref<128x128xbf16, #tpu.memory_space<vmem>>, %arg7: memref<128x128xbf16, #tpu.memory_space<vmem>>, %arg8: memref<1x128xf32, #tpu.memory_space<vmem>>, %arg9: memref<1x128xf32, #tpu.memory_space<vmem>>, %arg10: memref<1x128xf32, #tpu.memory_space<vmem>>, %arg11: memref<1x128xf32, #tpu.memory_space<vmem>>, %arg12: memref<1x128xf32, #tpu.memory_space<vmem>>, %arg13: memref<128x128xf32, #tpu.memory_space<vmem>>) attributes {dimension_semantics = [#tpu.dimension_semantics<arbitrary>], iteration_bounds = array<i64: 1>, scalar_prefetch = 0 : i64, scratch_operands = 0 : i64, tpu.core_type = #tpu.core_type<tc>, window_params = [{pipeline_mode = #tpu.pipeline_mode<synchronous>, transform_indices = @transform_0, window_bounds = array<i64: 128, 128>}, {pipeline_mode = #tpu.pipeline_mode<synchronous>, transform_indices = @transform_1, window_bounds = array<i64: 128, 128>}, {pipeline_mode = #tpu.pipeline_mode<synchronous>, transform_indices = @transform_2, window_bounds = array<i64: 128, 128>}, {pipeline_mode = #tpu.pipeline_mode<synchronous>, transform_indices = @transform_3, window_bounds = array<i64: 128, 128>}, {pipeline_mode = #tpu.pipeline_mode<synchronous>, transform_indices = @transform_4, window_bounds = array<i64: 128, 128>}, {pipeline_mode = #tpu.pipeline_mode<synchronous>, transform_indices = @transform_5, window_bounds = array<i64: 128, 128>}, {pipeline_mode = #tpu.pipeline_mode<synchronous>, transform_indices = @transform_6, window_bounds = array<i64: 128, 128>}, {pipeline_mode = #tpu.pipeline_mode<synchronous>, transform_indices = @transform_7, window_bounds = array<i64: 1, 128>}, {pipeline_mode = #tpu.pipeline_mode<synchronous>, transform_indices = @transform_8, window_bounds = array<i64: 1, 128>}, {pipeline_mode = #tpu.pipeline_mode<synchronous>, transform_indices = @transform_9, window_bounds = array<i64: 1, 128>}, {pipeline_mode = #tpu.pipeline_mode<synchronous>, transform_indices = @transform_10, window_bounds = array<i64: 1, 128>}, {pipeline_mode = #tpu.pipeline_mode<synchronous>, transform_indices = @transform_11, window_bounds = array<i64: 1, 128>}, {pipeline_mode = #tpu.pipeline_mode<synchronous>, transform_indices = @transform_12, window_bounds = array<i64: 128, 128>}]} {
    %c0 = arith.constant 0 : index
    %c0_0 = arith.constant 0 : index
    %0 = vector.load %arg1[%c0, %c0_0] : memref<128x128xbf16, #tpu.memory_space<vmem>>, vector<128x128xbf16>
    %c0_1 = arith.constant 0 : index
    %c0_2 = arith.constant 0 : index
    %1 = vector.load %arg2[%c0_1, %c0_2] : memref<128x128xbf16, #tpu.memory_space<vmem>>, vector<128x128xbf16>
    %c0_3 = arith.constant 0 : index
    %c0_4 = arith.constant 0 : index
    %2 = vector.load %arg3[%c0_3, %c0_4] : memref<128x128xbf16, #tpu.memory_space<vmem>>, vector<128x128xbf16>
    %cst = arith.constant dense<0.000000e+00> : vector<128x128xf32>
    %3 = tpu.matmul %1, %2, %cst {dimension_numbers = #tpu.dot_dimension_numbers<[1], [0], [0], [1], [0, 0, 1, 1], [], []>} : vector<128x128xbf16>, vector<128x128xbf16>, vector<128x128xf32> -> vector<128x128xf32>
    %4 = arith.truncf %3 : vector<128x128xf32> to vector<128x128xbf16>
    %cst_5 = arith.constant dense<0.000000e+00> : vector<128x128xf32>
    %5 = tpu.matmul %0, %4, %cst_5 {dimension_numbers = #tpu.dot_dimension_numbers<[1], [0], [0], [1], [0, 0, 1, 1], [], []>} : vector<128x128xbf16>, vector<128x128xbf16>, vector<128x128xf32> -> vector<128x128xf32>
    %c0_6 = arith.constant 0 : index
    %c0_7 = arith.constant 0 : index
    %6 = vector.load %arg8[%c0_6, %c0_7] : memref<1x128xf32, #tpu.memory_space<vmem>>, vector<1x128xf32>
    %7 = vector.broadcast %6 : vector<1x128xf32> to vector<128x128xf32>
    %8 = arith.addf %5, %7 : vector<128x128xf32>
    %cst_8 = arith.constant 0.000000e+00 : f32
    %9 = vector.broadcast %cst_8 : f32 to vector<128x128xf32>
    %10 = arith.cmpf ogt, %8, %9 : vector<128x128xf32>
    %cst_9 = arith.constant 0.00999999977 : f32
    %11 = vector.broadcast %cst_9 : f32 to vector<128x128xf32>
    %12 = arith.mulf %11, %8 : vector<128x128xf32>
    %13 = arith.select %10, %8, %12 : vector<128x128xi1>, vector<128x128xf32>
    %14 = arith.truncf %13 : vector<128x128xf32> to vector<128x128xbf16>
    %c0_10 = arith.constant 0 : index
    %c0_11 = arith.constant 0 : index
    %15 = vector.load %arg4[%c0_10, %c0_11] : memref<128x128xbf16, #tpu.memory_space<vmem>>, vector<128x128xbf16>
    %cst_12 = arith.constant dense<0.000000e+00> : vector<128x128xf32>
    %16 = tpu.matmul %14, %15, %cst_12 {dimension_numbers = #tpu.dot_dimension_numbers<[1], [0], [0], [1], [0, 0, 1, 1], [], []>} : vector<128x128xbf16>, vector<128x128xbf16>, vector<128x128xf32> -> vector<128x128xf32>
    %17 = arith.truncf %16 : vector<128x128xf32> to vector<128x128xbf16>
    %cst_13 = arith.constant dense<0.000000e+00> : vector<128x128xf32>
    %18 = tpu.matmul %0, %17, %cst_13 {dimension_numbers = #tpu.dot_dimension_numbers<[1], [0], [0], [1], [0, 0, 1, 1], [], []>} : vector<128x128xbf16>, vector<128x128xbf16>, vector<128x128xf32> -> vector<128x128xf32>
    %c0_14 = arith.constant 0 : index
    %c0_15 = arith.constant 0 : index
    %19 = vector.load %arg9[%c0_14, %c0_15] : memref<1x128xf32, #tpu.memory_space<vmem>>, vector<1x128xf32>
    %20 = vector.broadcast %19 : vector<1x128xf32> to vector<128x128xf32>
    %21 = arith.addf %18, %20 : vector<128x128xf32>
    %cst_16 = arith.constant 0.000000e+00 : f32
    %22 = vector.broadcast %cst_16 : f32 to vector<128x128xf32>
    %23 = arith.cmpf ogt, %21, %22 : vector<128x128xf32>
    %cst_17 = arith.constant 0.00999999977 : f32
    %24 = vector.broadcast %cst_17 : f32 to vector<128x128xf32>
    %25 = arith.mulf %24, %21 : vector<128x128xf32>
    %26 = arith.select %23, %21, %25 : vector<128x128xi1>, vector<128x128xf32>
    %27 = arith.truncf %26 : vector<128x128xf32> to vector<128x128xbf16>
    %c0_18 = arith.constant 0 : index
    %c0_19 = arith.constant 0 : index
    %28 = vector.load %arg5[%c0_18, %c0_19] : memref<128x128xbf16, #tpu.memory_space<vmem>>, vector<128x128xbf16>
    %cst_20 = arith.constant dense<0.000000e+00> : vector<128x128xf32>
    %29 = tpu.matmul %27, %28, %cst_20 {dimension_numbers = #tpu.dot_dimension_numbers<[1], [0], [0], [1], [0, 0, 1, 1], [], []>} : vector<128x128xbf16>, vector<128x128xbf16>, vector<128x128xf32> -> vector<128x128xf32>
    %30 = arith.truncf %29 : vector<128x128xf32> to vector<128x128xbf16>
    %cst_21 = arith.constant dense<0.000000e+00> : vector<128x128xf32>
    %31 = tpu.matmul %0, %30, %cst_21 {dimension_numbers = #tpu.dot_dimension_numbers<[1], [0], [0], [1], [0, 0, 1, 1], [], []>} : vector<128x128xbf16>, vector<128x128xbf16>, vector<128x128xf32> -> vector<128x128xf32>
    %c0_22 = arith.constant 0 : index
    %c0_23 = arith.constant 0 : index
    %32 = vector.load %arg10[%c0_22, %c0_23] : memref<1x128xf32, #tpu.memory_space<vmem>>, vector<1x128xf32>
    %33 = vector.broadcast %32 : vector<1x128xf32> to vector<128x128xf32>
    %34 = arith.addf %31, %33 : vector<128x128xf32>
    %cst_24 = arith.constant 0.000000e+00 : f32
    %35 = vector.broadcast %cst_24 : f32 to vector<128x128xf32>
    %36 = arith.cmpf ogt, %34, %35 : vector<128x128xf32>
    %cst_25 = arith.constant 0.00999999977 : f32
    %37 = vector.broadcast %cst_25 : f32 to vector<128x128xf32>
    %38 = arith.mulf %37, %34 : vector<128x128xf32>
    %39 = arith.select %36, %34, %38 : vector<128x128xi1>, vector<128x128xf32>
    %40 = arith.truncf %39 : vector<128x128xf32> to vector<128x128xbf16>
    %c0_26 = arith.constant 0 : index
    %c0_27 = arith.constant 0 : index
    %41 = vector.load %arg6[%c0_26, %c0_27] : memref<128x128xbf16, #tpu.memory_space<vmem>>, vector<128x128xbf16>
    %cst_28 = arith.constant dense<0.000000e+00> : vector<128x128xf32>
    %42 = tpu.matmul %40, %41, %cst_28 {dimension_numbers = #tpu.dot_dimension_numbers<[1], [0], [0], [1], [0, 0, 1, 1], [], []>} : vector<128x128xbf16>, vector<128x128xbf16>, vector<128x128xf32> -> vector<128x128xf32>
    %43 = arith.truncf %42 : vector<128x128xf32> to vector<128x128xbf16>
    %cst_29 = arith.constant dense<0.000000e+00> : vector<128x128xf32>
    %44 = tpu.matmul %0, %43, %cst_29 {dimension_numbers = #tpu.dot_dimension_numbers<[1], [0], [0], [1], [0, 0, 1, 1], [], []>} : vector<128x128xbf16>, vector<128x128xbf16>, vector<128x128xf32> -> vector<128x128xf32>
    %c0_30 = arith.constant 0 : index
    %c0_31 = arith.constant 0 : index
    %45 = vector.load %arg11[%c0_30, %c0_31] : memref<1x128xf32, #tpu.memory_space<vmem>>, vector<1x128xf32>
    %46 = vector.broadcast %45 : vector<1x128xf32> to vector<128x128xf32>
    %47 = arith.addf %44, %46 : vector<128x128xf32>
    %cst_32 = arith.constant 0.000000e+00 : f32
    %48 = vector.broadcast %cst_32 : f32 to vector<128x128xf32>
    %49 = arith.cmpf ogt, %47, %48 : vector<128x128xf32>
    %cst_33 = arith.constant 0.00999999977 : f32
    %50 = vector.broadcast %cst_33 : f32 to vector<128x128xf32>
    %51 = arith.mulf %50, %47 : vector<128x128xf32>
    %52 = arith.select %49, %47, %51 : vector<128x128xi1>, vector<128x128xf32>
    %53 = arith.truncf %52 : vector<128x128xf32> to vector<128x128xbf16>
    %c0_34 = arith.constant 0 : index
    %c0_35 = arith.constant 0 : index
    %54 = vector.load %arg7[%c0_34, %c0_35] : memref<128x128xbf16, #tpu.memory_space<vmem>>, vector<128x128xbf16>
    %cst_36 = arith.constant dense<0.000000e+00> : vector<128x128xf32>
    %55 = tpu.matmul %53, %54, %cst_36 {dimension_numbers = #tpu.dot_dimension_numbers<[1], [0], [0], [1], [0, 0, 1, 1], [], []>} : vector<128x128xbf16>, vector<128x128xbf16>, vector<128x128xf32> -> vector<128x128xf32>
    %56 = arith.truncf %55 : vector<128x128xf32> to vector<128x128xbf16>
    %cst_37 = arith.constant dense<0.000000e+00> : vector<128x128xf32>
    %57 = tpu.matmul %0, %56, %cst_37 {dimension_numbers = #tpu.dot_dimension_numbers<[1], [0], [0], [1], [0, 0, 1, 1], [], []>} : vector<128x128xbf16>, vector<128x128xbf16>, vector<128x128xf32> -> vector<128x128xf32>
    %c0_38 = arith.constant 0 : index
    %c0_39 = arith.constant 0 : index
    %58 = vector.load %arg12[%c0_38, %c0_39] : memref<1x128xf32, #tpu.memory_space<vmem>>, vector<1x128xf32>
    %59 = vector.broadcast %58 : vector<1x128xf32> to vector<128x128xf32>
    %60 = arith.addf %57, %59 : vector<128x128xf32>
    %c0_40 = arith.constant 0 : index
    %c0_41 = arith.constant 0 : index
    %61 = vector.load %arg13[%c0_40, %c0_41] : memref<128x128xf32, #tpu.memory_space<vmem>>, vector<128x128xf32>
    tpu.vector_store %arg13[%c0_40, %c0_41], %60 {strides = array<i32>} : memref<128x128xf32, #tpu.memory_space<vmem>>, vector<128x128xf32>,
    return
  }
  func.func @transform_0(%arg0: i32) -> (i32, i32) {
    %c0_i32 = arith.constant 0 : i32
    %c0_i32_0 = arith.constant 0 : i32
    %c0_i32_1 = arith.constant 0 : i32
    return %c0_i32, %c0_i32_0 : i32, i32
  }
  func.func @transform_1(%arg0: i32) -> (i32, i32) {
    %c0_i32 = arith.constant 0 : i32
    %c0_i32_0 = arith.constant 0 : i32
    %c0_i32_1 = arith.constant 0 : i32
    return %c0_i32, %c0_i32_0 : i32, i32
  }
  func.func @transform_2(%arg0: i32) -> (i32, i32) {
    %c0_i32 = arith.constant 0 : i32
    %c0_i32_0 = arith.constant 0 : i32
    %c0_i32_1 = arith.constant 0 : i32
    return %c0_i32, %c0_i32_0 : i32, i32
  }
  func.func @transform_3(%arg0: i32) -> (i32, i32) {
    %c0_i32 = arith.constant 0 : i32
    %c0_i32_0 = arith.constant 0 : i32
    %c0_i32_1 = arith.constant 0 : i32
    return %c0_i32, %c0_i32_0 : i32, i32
  }
  func.func @transform_4(%arg0: i32) -> (i32, i32) {
    %c0_i32 = arith.constant 0 : i32
    %c0_i32_0 = arith.constant 0 : i32
    %c0_i32_1 = arith.constant 0 : i32
    return %c0_i32, %c0_i32_0 : i32, i32
  }
  func.func @transform_5(%arg0: i32) -> (i32, i32) {
    %c0_i32 = arith.constant 0 : i32
    %c0_i32_0 = arith.constant 0 : i32
    %c0_i32_1 = arith.constant 0 : i32
    return %c0_i32, %c0_i32_0 : i32, i32
  }
  func.func @transform_6(%arg0: i32) -> (i32, i32) {
    %c0_i32 = arith.constant 0 : i32
    %c0_i32_0 = arith.constant 0 : i32
    %c0_i32_1 = arith.constant 0 : i32
    return %c0_i32, %c0_i32_0 : i32, i32
  }
  func.func @transform_7(%arg0: i32) -> (i32, i32) {
    %c0_i32 = arith.constant 0 : i32
    %c0_i32_0 = arith.constant 0 : i32
    %c0_i32_1 = arith.constant 0 : i32
    return %c0_i32, %c0_i32_0 : i32, i32
  }
  func.func @transform_8(%arg0: i32) -> (i32, i32) {
    %c0_i32 = arith.constant 0 : i32
    %c0_i32_0 = arith.constant 0 : i32
    %c0_i32_1 = arith.constant 0 : i32
    return %c0_i32, %c0_i32_0 : i32, i32
  }
  func.func @transform_9(%arg0: i32) -> (i32, i32) {
    %c0_i32 = arith.constant 0 : i32
    %c0_i32_0 = arith.constant 0 : i32
    %c0_i32_1 = arith.constant 0 : i32
    return %c0_i32, %c0_i32_0 : i32, i32
  }
  func.func @transform_10(%arg0: i32) -> (i32, i32) {
    %c0_i32 = arith.constant 0 : i32
    %c0_i32_0 = arith.constant 0 : i32
    %c0_i32_1 = arith.constant 0 : i32
    return %c0_i32, %c0_i32_0 : i32, i32
  }
  func.func @transform_11(%arg0: i32) -> (i32, i32) {
    %c0_i32 = arith.constant 0 : i32
    %c0_i32_0 = arith.constant 0 : i32
    %c0_i32_1 = arith.constant 0 : i32
    return %c0_i32, %c0_i32_0 : i32, i32
  }
  func.func @transform_12(%arg0: i32) -> (i32, i32) {
    %c0_i32 = arith.constant 0 : i32
    %c0_i32_0 = arith.constant 0 : i32
    %c0_i32_1 = arith.constant 0 : i32
    return %c0_i32, %c0_i32_0 : i32, i32
  }
}

</mosaic_0001>

<bundles_post_ra>
// kernel: gae_encoder_forward.1
= control target key start
LH: loop header
LB: loop body
LE: loop exit
PB: predicated region body
PF: predicated region fallthrough
CT: control target
= control target key end

     0   :  { %s2845_s2 = inlined_call_operand.vmem [shape: bf16[128,128], index: 2, kind: input, shape index: {}]   ;;  %s2846_s1 = inlined_call_operand.vmem [shape: bf16[128,128], index: 1, kind: input, shape index: {}]   ;;  %s2847_s0 = inlined_call_operand.vmem [shape: bf16[128,128], index: 0, kind: input, shape index: {}]   ;;  %s2848_s3 = inlined_call_operand.vmem [shape: bf16[128,128], index: 3, kind: input, shape index: {}]   ;;  %s2849_s7 = inlined_call_operand.vmem [shape: f32[1,128], index: 7, kind: input, shape index: {}]   ;;  %s2850_s4 = inlined_call_operand.vmem [shape: bf16[128,128], index: 4, kind: input, shape index: {}]   ;;  %s2851_s8 = inlined_call_operand.vmem [shape: f32[1,128], index: 8, kind: input, shape index: {}]   ;;  %s2852_s5 = inlined_call_operand.vmem [shape: bf16[128,128], index: 5, kind: input, shape index: {}]   ;;  %s2853_s9 = inlined_call_operand.vmem [shape: f32[1,128], index: 9, kind: input, shape index: {}]   ;;  %s2854_s6 = inlined_call_operand.vmem [shape: bf16[128,128], index: 6, kind: input, shape index: {}]   ;;  %s2855_s10 = inlined_call_operand.vmem [shape: f32[1,128], index: 10, kind: input, shape index: {}]   ;;  %s2856_s11 = inlined_call_operand.vmem [shape: f32[1,128], index: 11, kind: input, shape index: {}]   ;;  %s2857_s12 = inlined_call_operand.vmem [shape: f32[128,128], index: 12, kind: output, shape index: {}]  }
   0x1   :  { %v2320_v0 = vld [vmem:[%s2845_s2] sm:$0xff]   ;;  %v2321_v1 = vld [vmem:[%s2845_s2 + $0x8] sm:$0xff]   ;;  %v2322_v2 = vld [vmem:[%s2845_s2 + $0x10] sm:$0xff]  }
   0x2   :  { %2000 = vmatprep.subr.bf16.mxu0 %v2320_v0  ;;  %v2323_v3 = vld [vmem:[%s2845_s2 + $0x18] sm:$0xff]   ;;  %v2328_v4 = vld [vmem:[%s2846_s1] sm:$0xff]   ;;  %v2325_v6 = vld [vmem:[%s2845_s2 + $0x28] sm:$0xff]  }
   0x3   :  { %2001 = vmatpush3.bf16.msra.mxu0 %v2320_v0  ;;  %2016 = vmatprep.mubr.bf16.mxu0 %v2328_v4  ;;  %v2324_v5 = vld [vmem:[%s2845_s2 + $0x20] sm:$0xff]   ;;  %v2326_v7 = vld [vmem:[%s2845_s2 + $0x30] sm:$0xff]   ;;  %v2327_v8 = vld [vmem:[%s2845_s2 + $0x38] sm:$0xff]  }
   0x4   :  { %2002 = vmatprep.subr.bf16.mxu0 %v2321_v1  ;;  %v2329_v9 = vld [vmem:[%s2846_s1 + $0x8] sm:$0xff]   ;;  %v2330_v10 = vld [vmem:[%s2846_s1 + $0x10] sm:$0xff]   ;;  %v2331_v11 = vld [vmem:[%s2846_s1 + $0x18] sm:$0xff]  }
   0x5   :  { %v2332_v12 = vld [vmem:[%s2846_s1 + $0x20] sm:$0xff]   ;;  %v2333_v13 = vld [vmem:[%s2846_s1 + $0x28] sm:$0xff]   ;;  %v2334_v14 = vld [vmem:[%s2846_s1 + $0x30] sm:$0xff]  }
   0x6   :  { %v2335_v15 = vld [vmem:[%s2846_s1 + $0x38] sm:$0xff]   ;;  %v2500_v16 = vld [vmem:[%s2847_s0] sm:$0xff]   ;;  %v2345_v18 = vld [vmem:[%s2848_s3 + $0x8] sm:$0xff]  }
   0x7   :  { %2003 = vmatpush3.bf16.msra.mxu0 %v2321_v1  ;;  %2048 = vmatprep.mubr.bf16.mxu1 %v2500_v16  ;;  %v2344_v17 = vld [vmem:[%s2848_s3] sm:$0xff]   ;;  %v2346_v19 = vld [vmem:[%s2848_s3 + $0x10] sm:$0xff]   ;;  %v2347_v20 = vld [vmem:[%s2848_s3 + $0x18] sm:$0xff]  }
   0x8   :  { %2004 = vmatprep.subr.bf16.mxu0 %v2322_v2  ;;  %v2348_v21 = vld [vmem:[%s2848_s3 + $0x20] sm:$0xff]   ;;  %v2521_v46 = vld [vmem:[%s2847_s0 + $0x8] sm:$0xff]   ;;  %v2526_v47 = vld [vmem:[%s2847_s0 + $0x10] sm:$0xff]  }
   0x9   :  { %v2533_v48 = vld [vmem:[%s2847_s0 + $0x18] sm:$0xff]   ;;  %v2538_v49 = vld [vmem:[%s2847_s0 + $0x20] sm:$0xff]   ;;  %v2545_v50 = vld [vmem:[%s2847_s0 + $0x28] sm:$0xff]  }
   0xa   :  { %v2550_v51 = vld [vmem:[%s2847_s0 + $0x30] sm:$0xff]   ;;  %v2557_v52 = vld [vmem:[%s2847_s0 + $0x38] sm:$0xff]   ;;  %v2349_v53 = vld [vmem:[%s2848_s3 + $0x28] sm:$0xff]  }
   0xb   :  { %2005 = vmatpush3.bf16.msra.mxu0 %v2322_v2  ;;  %v2350_v54 = vld [vmem:[%s2848_s3 + $0x30] sm:$0xff]   ;;  %v2351_v55 = vld [vmem:[%s2848_s3 + $0x38] sm:$0xff]   ;;  %v2573_v56 = vld [vmem:[%s2849_s7] ss:$0 sm:$0xff] }
   0xc   :  { %2006 = vmatprep.subr.bf16.mxu0 %v2323_v3 }
   0xf   :  { %2007 = vmatpush3.bf16.msra.mxu0 %v2323_v3 }
  0x10   :  { %2008 = vmatprep.subr.bf16.mxu0 %v2324_v5 }
  0x13   :  { %2009 = vmatpush3.bf16.msra.mxu0 %v2324_v5 }
  0x14   :  { %2010 = vmatprep.subr.bf16.mxu0 %v2325_v6 }
  0x17   :  { %2011 = vmatpush3.bf16.msra.mxu0 %v2325_v6 }
  0x18   :  { %2012 = vmatprep.subr.bf16.mxu0 %v2326_v7 }
  0x1b   :  { %2013 = vmatpush3.bf16.msra.mxu0 %v2326_v7 }
  0x1c   :  { %2014 = vmatprep.subr.bf16.mxu0 %v2327_v8 }
  0x1f   :  { %2015 = vmatpush3.bf16.msra.mxu0 %v2327_v8 }
  0x20   :  { %2064 = vmatprep.subr.bf16.mxu0 %v2344_v17 }
  0x22   :  { %2017 = vmatmul.mubr.bf16.vlgmr.msra.gmra.mrb[0].mxu0 %v2329_v9 }
  0x23   :  { %2020 = vmatprep.mubr.bf16.mxu0 %v2330_v10  ;;  %2065 = vmatpush3.bf16.msra.mxu0 %v2344_v17 }
  0x24   :  { %2066 = vmatprep.subr.bf16.mxu0 %v2345_v18 }
  0x27   :  { %2067 = vmatpush3.bf16.msra.mxu0 %v2345_v18 }
  0x28   :  { %2068 = vmatprep.subr.bf16.mxu0 %v2346_v19 }
  0x2a   :  { %2021 = vmatmul.mubr.bf16.gmra.mrb[4].mxu0 %v2331_v11 }
  0x2b   :  { %2024 = vmatprep.mubr.bf16.mxu0 %v2332_v12  ;;  %2069 = vmatpush3.bf16.msra.mxu0 %v2346_v19 }
  0x2c   :  { %2070 = vmatprep.subr.bf16.mxu0 %v2347_v20 }
  0x2f   :  { %2071 = vmatpush3.bf16.msra.mxu0 %v2347_v20 }
  0x30   :  { %2072 = vmatprep.subr.bf16.mxu0 %v2348_v21 }
  0x32   :  { %2025 = vmatmul.mubr.bf16.gmra.mrb[8].mxu0 %v2333_v13 }
  0x33   :  { %2028 = vmatprep.mubr.bf16.mxu0 %v2334_v14  ;;  %2073 = vmatpush3.bf16.msra.mxu0 %v2348_v21 }
  0x34   :  { %2074 = vmatprep.subr.bf16.mxu0 %v2349_v53 }
  0x37   :  { %2075 = vmatpush3.bf16.msra.mxu0 %v2349_v53 }
  0x38   :  { %2076 = vmatprep.subr.bf16.mxu0 %v2350_v54 }
  0x3a   :  { %2029 = vmatmul.mubr.bf16.gmra.mrb[12].mxu0 %v2335_v15 }
  0x3b   :  { %2077 = vmatpush3.bf16.msra.mxu0 %v2350_v54 }
  0x3c   :  { %2078 = vmatprep.subr.bf16.mxu0 %v2351_v55 }
  0x3f   :  { %2079 = vmatpush3.bf16.msra.mxu0 %v2351_v55 }
  0xf5   :  { %v2018_v22 = vpop.f32.mrb[0].mxu0 }
  0xf6   :  { %v220_v23 = vpop.f32.mrb[1].mxu0 }
  0xf7   :  { %v2019_v24 = vpop.f32.mrb[2].mxu0 }
  0xf8   :  { %v284_v25 = vpack.c.bf16 %v2019_v24, %v2018_v22  ;;  %v223_v26 = vpop.f32.mrb[3].mxu0 }
  0xf9   :  { %v283_v27 = vpack.c.bf16 %v223_v26, %v220_v23 }
  0xfb   :  { %2032 = vmatprep.subr.bf16.mxu1 %v283_v27 }
  0xfc   :  { %2033 = vmatpush3.bf16.msra.mxu1 %v283_v27 }
  0xfd   :  { %v2022_v28 = vpop.f32.mrb[4].mxu0  ;;  %2034 = vmatprep.subr.bf16.mxu1 %v284_v25 }
  0xfe   :  { %v236_v29 = vpop.f32.mrb[5].mxu0 }
  0xff   :  { %v2023_v30 = vpop.f32.mrb[6].mxu0 }
 0x100   :  { %v286_v31 = vpack.c.bf16 %v2023_v30, %v2022_v28  ;;  %v239_v32 = vpop.f32.mrb[7].mxu0  ;;  %2035 = vmatpush3.bf16.msra.mxu1 %v284_v25 }
 0x101   :  { %v285_v33 = vpack.c.bf16 %v239_v32, %v236_v29 }
 0x103   :  { %2036 = vmatprep.subr.bf16.mxu1 %v285_v33 }
 0x104   :  { %2037 = vmatpush3.bf16.msra.mxu1 %v285_v33 }
 0x105   :  { %v2026_v34 = vpop.f32.mrb[8].mxu0  ;;  %2038 = vmatprep.subr.bf16.mxu1 %v286_v31 }
 0x106   :  { %v252_v35 = vpop.f32.mrb[9].mxu0 }
 0x107   :  { %v2027_v36 = vpop.f32.mrb[10].mxu0 }
 0x108   :  { %v288_v37 = vpack.c.bf16 %v2027_v36, %v2026_v34  ;;  %v255_v38 = vpop.f32.mrb[11].mxu0  ;;  %2039 = vmatpush3.bf16.msra.mxu1 %v286_v31 }
 0x109   :  { %v287_v39 = vpack.c.bf16 %v255_v38, %v252_v35 }
 0x10b   :  { %2040 = vmatprep.subr.bf16.mxu1 %v287_v39 }
 0x10c   :  { %2041 = vmatpush3.bf16.msra.mxu1 %v287_v39 }
 0x10d   :  { %v2030_v40 = vpop.f32.mrb[12].mxu0  ;;  %2042 = vmatprep.subr.bf16.mxu1 %v288_v37 }
 0x10e   :  { %v268_v41 = vpop.f32.mrb[13].mxu0 }
 0x10f   :  { %v2031_v42 = vpop.f32.mrb[14].mxu0 }
 0x110   :  { %v290_v43 = vpack.c.bf16 %v2031_v42, %v2030_v40  ;;  %v271_v44 = vpop.f32.mrb[15].mxu0  ;;  %2043 = vmatpush3.bf16.msra.mxu1 %v288_v37 }
 0x111   :  { %v289_v45 = vpack.c.bf16 %v271_v44, %v268_v41 }
 0x113   :  { %2044 = vmatprep.subr.bf16.mxu1 %v289_v45 }
 0x114   :  { %2045 = vmatpush3.bf16.msra.mxu1 %v289_v45 }
 0x115   :  { %2046 = vmatprep.subr.bf16.mxu1 %v290_v43 }
 0x118   :  { %2047 = vmatpush3.bf16.msra.mxu1 %v290_v43 }
 0x11b   :  { %2049 = vmatmul.mubr.bf16.vlgmr.msra.gmra.mrb[0].mxu1 %v2521_v46 }
 0x11c   :  { %2052 = vmatprep.mubr.bf16.mxu1 %v2526_v47 }
 0x123   :  { %2053 = vmatmul.mubr.bf16.gmra.mrb[4].mxu1 %v2533_v48 }
 0x124   :  { %2056 = vmatprep.mubr.bf16.mxu1 %v2538_v49 }
 0x12b   :  { %2057 = vmatmul.mubr.bf16.gmra.mrb[8].mxu1 %v2545_v50 }
 0x12c   :  { %2060 = vmatprep.mubr.bf16.mxu1 %v2550_v51 }
 0x133   :  { %2061 = vmatmul.mubr.bf16.gmra.mrb[12].mxu1 %v2557_v52 }
 0x134   :  { %2112 = vmatprep.mubr.bf16.mxu1 %v2500_v16 }
 0x1ee   :  { %v2050_v57 = vpop.f32.mrb[0].mxu1 }
 0x1ef   :  { %v389_v58 = vadd.f32 %v2050_v57, %v2573_v56  ;;  %v380_v59 = vpop.f32.mrb[1].mxu1 }
 0x1f0   :  { %v381_v60 = vadd.f32 %v2573_v56, %v380_v59  ;;  %v2051_v61 = vpop.f32.mrb[2].mxu1 }
 0x1f1   :  { %v461_v62 = vmul.f32 0.01, %v389_v58  ;;  %v392_v63 = vadd.f32 %v2051_v61, %v2573_v56  ;;  %v383_v0 = vpop.f32.mrb[3].mxu1  ;;  %vm445_vm0 = vcmp.gt.f32.partialorder %v389_v58, 0.0 }
 0x1f2   :  { %v459_v1 = vmul.f32 0.01, %v381_v60  ;;  %v384_v2 = vadd.f32 %v2573_v56, %v383_v0  ;;  %vm443_vm1 = vcmp.gt.f32.partialorder %v381_v60, 0.0 }
 0x1f3   :  { %vm446_vm2 = vcmp.gt.f32.partialorder %v392_v63, 0.0  ;;  %v462_v3 = vmul.f32 0.01, %v392_v63  ;;  %v477_v5 = vsel %vm445_vm0, %v389_v58, %v461_v62 }
 0x1f4   :  { %vm444_vm3 = vcmp.gt.f32.partialorder %v384_v2, 0.0  ;;  %v460_v4 = vmul.f32 0.01, %v384_v2  ;;  %v475_v9 = vsel %vm443_vm1, %v381_v60, %v459_v1 }
 0x1f5   :  { %v478_v6 = vsel %vm446_vm2, %v392_v63, %v462_v3 }
 0x1f6   :  { %v492_v7 = vpack.c.bf16 %v478_v6, %v477_v5  ;;  %v2054_v8 = vpop.f32.mrb[4].mxu1  ;;  %v476_v10 = vsel %vm444_vm3, %v384_v2, %v460_v4 }
 0x1f7   :  { %v405_v11 = vadd.f32 %v2054_v8, %v2573_v56  ;;  %v396_v12 = vpop.f32.mrb[5].mxu1  ;;  %v491_v13 = vpack.c.bf16 %v476_v10, %v475_v9  ;;  %v2352_v10 = vld [vmem:[%s2850_s4] sm:$0xff]  }
 0x1f8   :  { %v397_v14 = vadd.f32 %v2573_v56, %v396_v12  ;;  %v2055_v15 = vpop.f32.mrb[6].mxu1  ;;  %2128 = vmatprep.subr.bf16.mxu0 %v2352_v10  ;;  %v2355_v12 = vld [vmem:[%s2850_s4 + $0x18] sm:$0xff]  }
 0x1f9   :  { %v465_v17 = vmul.f32 0.01, %v405_v11  ;;  %v408_v18 = vadd.f32 %v2055_v15, %v2573_v56  ;;  %v399_v19 = vpop.f32.mrb[7].mxu1  ;;  %2080 = vmatprep.mubr.bf16.mxu0 %v491_v13  ;;  %vm449_vm4 = vcmp.gt.f32.partialorder %v405_v11, 0.0  ;;  %v2356_v13 = vld [vmem:[%s2850_s4 + $0x20] sm:$0xff]  }
 0x1fa   :  { %v463_v20 = vmul.f32 0.01, %v397_v14  ;;  %v400_v21 = vadd.f32 %v2573_v56, %v399_v19  ;;  %2081 = vmatmul.mubr.bf16.vlgmr.msra.gmra.mrb[16].mxu0 %v492_v7  ;;  %vm447_vm5 = vcmp.gt.f32.partialorder %v397_v14, 0.0 }
 0x1fb   :  { %vm450_vm6 = vcmp.gt.f32.partialorder %v408_v18, 0.0  ;;  %v466_v22 = vmul.f32 0.01, %v408_v18  ;;  %v481_v24 = vsel %vm449_vm4, %v405_v11, %v465_v17  ;;  %2129 = vmatpush3.bf16.msra.mxu0 %v2352_v10  ;;  %v2354_v11 = vld [vmem:[%s2850_s4 + $0x10] sm:$0xff]  }
 0x1fc   :  { %vm448_vm7 = vcmp.gt.f32.partialorder %v400_v21, 0.0  ;;  %v464_v23 = vmul.f32 0.01, %v400_v21  ;;  %v479_v27 = vsel %vm447_vm5, %v397_v14, %v463_v20 }
 0x1fd   :  { %v482_v25 = vsel %vm450_vm6, %v408_v18, %v466_v22 }
 0x1fe   :  { %v2058_v26 = vpop.f32.mrb[8].mxu1  ;;  %v480_v28 = vsel %vm448_vm7, %v400_v21, %v464_v23  ;;  %v494_v29 = vpack.c.bf16 %v482_v25, %v481_v24 }
 0x1ff   :  { %v421_v30 = vadd.f32 %v2058_v26, %v2573_v56  ;;  %v412_v31 = vpop.f32.mrb[9].mxu1  ;;  %v493_v32 = vpack.c.bf16 %v480_v28, %v479_v27 }
 0x200   :  { %v413_v33 = vadd.f32 %v2573_v56, %v412_v31  ;;  %v2059_v34 = vpop.f32.mrb[10].mxu1 }
 0x201   :  { %v469_v35 = vmul.f32 0.01, %v421_v30  ;;  %v424_v36 = vadd.f32 %v2059_v34, %v2573_v56  ;;  %v415_v37 = vpop.f32.mrb[11].mxu1  ;;  %2084 = vmatprep.mubr.bf16.mxu0 %v493_v32  ;;  %vm453_vm8 = vcmp.gt.f32.partialorder %v421_v30, 0.0 }
 0x202   :  { %v467_v38 = vmul.f32 0.01, %v413_v33  ;;  %v416_v39 = vadd.f32 %v2573_v56, %v415_v37  ;;  %2085 = vmatmul.mubr.bf16.gmra.mrb[20].mxu0 %v494_v29  ;;  %vm451_vm9 = vcmp.gt.f32.partialorder %v413_v33, 0.0 }
 0x203   :  { %vm454_vm10 = vcmp.gt.f32.partialorder %v424_v36, 0.0  ;;  %v470_v40 = vmul.f32 0.01, %v424_v36  ;;  %v485_v42 = vsel %vm453_vm8, %v421_v30, %v469_v35 }
 0x204   :  { %vm452_vm11 = vcmp.gt.f32.partialorder %v416_v39, 0.0  ;;  %v468_v41 = vmul.f32 0.01, %v416_v39  ;;  %v483_v45 = vsel %vm451_vm9, %v413_v33, %v467_v38 }
 0x205   :  { %v486_v43 = vsel %vm454_vm10, %v424_v36, %v470_v40  ;;  %v2358_v40 = vld [vmem:[%s2850_s4 + $0x30] sm:$0xff]  }
 0x206   :  { %v2062_v44 = vpop.f32.mrb[12].mxu1  ;;  %v484_v53 = vsel %vm452_vm11, %v416_v39, %v468_v41  ;;  %v496_v54 = vpack.c.bf16 %v486_v43, %v485_v42  ;;  %v2357_v39 = vld [vmem:[%s2850_s4 + $0x28] sm:$0xff]   ;;  %v2359_v41 = vld [vmem:[%s2850_s4 + $0x38] sm:$0xff]   ;;  %v2626_v42 = vld [vmem:[%s2851_s8] ss:$0 sm:$0xff] }
 0x207   :  { %v437_v55 = vadd.f32 %v2062_v44, %v2573_v56  ;;  %v428_v57 = vpop.f32.mrb[13].mxu1  ;;  %v495_v58 = vpack.c.bf16 %v484_v53, %v483_v45 }
 0x208   :  { %v429_v59 = vadd.f32 %v2573_v56, %v428_v57  ;;  %v2063_v60 = vpop.f32.mrb[14].mxu1 }
 0x209   :  { %v473_v61 = vmul.f32 0.01, %v437_v55  ;;  %v440_v62 = vadd.f32 %v2063_v60, %v2573_v56  ;;  %v431_v63 = vpop.f32.mrb[15].mxu1  ;;  %2088 = vmatprep.mubr.bf16.mxu0 %v495_v58  ;;  %vm457_vm12 = vcmp.gt.f32.partialorder %v437_v55, 0.0 }
 0x20a   :  { %v471_v0 = vmul.f32 0.01, %v429_v59  ;;  %v432_v1 = vadd.f32 %v2573_v56, %v431_v63  ;;  %2089 = vmatmul.mubr.bf16.gmra.mrb[24].mxu0 %v496_v54  ;;  %vm455_vm13 = vcmp.gt.f32.partialorder %v429_v59, 0.0  ;;  %v2353_v56 = vld [vmem:[%s2850_s4 + $0x8] sm:$0xff]  }
 0x20b   :  { %vm458_vm14 = vcmp.gt.f32.partialorder %v440_v62, 0.0  ;;  %v474_v2 = vmul.f32 0.01, %v440_v62  ;;  %v489_v4 = vsel %vm457_vm12, %v437_v55, %v473_v61  ;;  %2130 = vmatprep.subr.bf16.mxu0 %v2353_v56 }
 0x20c   :  { %vm456_vm15 = vcmp.gt.f32.partialorder %v432_v1, 0.0  ;;  %v472_v3 = vmul.f32 0.01, %v432_v1  ;;  %v487_v6 = vsel %vm455_vm13, %v429_v59, %v471_v0  ;;  %2131 = vmatpush3.bf16.msra.mxu0 %v2353_v56 }
 0x20d   :  { %v490_v5 = vsel %vm458_vm14, %v440_v62, %v474_v2  ;;  %2132 = vmatprep.subr.bf16.mxu0 %v2354_v11 }
 0x20e   :  { %v488_v7 = vsel %vm456_vm15, %v432_v1, %v472_v3  ;;  %v498_v8 = vpack.c.bf16 %v490_v5, %v489_v4 }
 0x20f   :  { %v497_v9 = vpack.c.bf16 %v488_v7, %v487_v6 }
 0x210   :  { %2133 = vmatpush3.bf16.msra.mxu0 %v2354_v11 }
 0x211   :  { %2092 = vmatprep.mubr.bf16.mxu0 %v497_v9  ;;  %2134 = vmatprep.subr.bf16.mxu0 %v2355_v12 }
 0x212   :  { %2093 = vmatmul.mubr.bf16.gmra.mrb[28].mxu0 %v498_v8 }
 0x214   :  { %2135 = vmatpush3.bf16.msra.mxu0 %v2355_v12 }
 0x215   :  { %2136 = vmatprep.subr.bf16.mxu0 %v2356_v13 }
 0x218   :  { %2137 = vmatpush3.bf16.msra.mxu0 %v2356_v13 }
 0x219   :  { %2138 = vmatprep.subr.bf16.mxu0 %v2357_v39 }
 0x21c   :  { %2139 = vmatpush3.bf16.msra.mxu0 %v2357_v39 }
 0x21d   :  { %2140 = vmatprep.subr.bf16.mxu0 %v2358_v40 }
 0x220   :  { %2141 = vmatpush3.bf16.msra.mxu0 %v2358_v40 }
 0x221   :  { %2142 = vmatprep.subr.bf16.mxu0 %v2359_v41 }
 0x224   :  { %2143 = vmatpush3.bf16.msra.mxu0 %v2359_v41 }
 0x2cd   :  { %v2082_v14 = vpop.f32.mrb[16].mxu0 }
 0x2ce   :  { %v597_v15 = vpop.f32.mrb[17].mxu0 }
 0x2cf   :  { %v2083_v17 = vpop.f32.mrb[18].mxu0 }
 0x2d0   :  { %v661_v18 = vpack.c.bf16 %v2083_v17, %v2082_v14  ;;  %v600_v19 = vpop.f32.mrb[19].mxu0 }
 0x2d1   :  { %v660_v20 = vpack.c.bf16 %v600_v19, %v597_v15 }
 0x2d3   :  { %2096 = vmatprep.subr.bf16.mxu1 %v660_v20 }
 0x2d4   :  { %2097 = vmatpush3.bf16.msra.mxu1 %v660_v20 }
 0x2d5   :  { %v2086_v21 = vpop.f32.mrb[20].mxu0  ;;  %2098 = vmatprep.subr.bf16.mxu1 %v661_v18 }
 0x2d6   :  { %v613_v22 = vpop.f32.mrb[21].mxu0 }
 0x2d7   :  { %v2087_v23 = vpop.f32.mrb[22].mxu0 }
 0x2d8   :  { %v663_v24 = vpack.c.bf16 %v2087_v23, %v2086_v21  ;;  %v616_v25 = vpop.f32.mrb[23].mxu0  ;;  %2099 = vmatpush3.bf16.msra.mxu1 %v661_v18 }
 0x2d9   :  { %v662_v26 = vpack.c.bf16 %v616_v25, %v613_v22 }
 0x2db   :  { %2100 = vmatprep.subr.bf16.mxu1 %v662_v26 }
 0x2dc   :  { %2101 = vmatpush3.bf16.msra.mxu1 %v662_v26 }
 0x2dd   :  { %v2090_v27 = vpop.f32.mrb[24].mxu0  ;;  %2102 = vmatprep.subr.bf16.mxu1 %v663_v24 }
 0x2de   :  { %v629_v28 = vpop.f32.mrb[25].mxu0 }
 0x2df   :  { %v2091_v29 = vpop.f32.mrb[26].mxu0 }
 0x2e0   :  { %v665_v30 = vpack.c.bf16 %v2091_v29, %v2090_v27  ;;  %v632_v31 = vpop.f32.mrb[27].mxu0  ;;  %2103 = vmatpush3.bf16.msra.mxu1 %v663_v24 }
 0x2e1   :  { %v664_v32 = vpack.c.bf16 %v632_v31, %v629_v28 }
 0x2e3   :  { %2104 = vmatprep.subr.bf16.mxu1 %v664_v32 }
 0x2e4   :  { %2105 = vmatpush3.bf16.msra.mxu1 %v664_v32 }
 0x2e5   :  { %v2094_v33 = vpop.f32.mrb[28].mxu0  ;;  %2106 = vmatprep.subr.bf16.mxu1 %v665_v30 }
 0x2e6   :  { %v645_v34 = vpop.f32.mrb[29].mxu0 }
 0x2e7   :  { %v2095_v35 = vpop.f32.mrb[30].mxu0 }
 0x2e8   :  { %v667_v36 = vpack.c.bf16 %v2095_v35, %v2094_v33  ;;  %v648_v37 = vpop.f32.mrb[31].mxu0  ;;  %2107 = vmatpush3.bf16.msra.mxu1 %v665_v30 }
 0x2e9   :  { %v666_v38 = vpack.c.bf16 %v648_v37, %v645_v34 }
 0x2eb   :  { %2108 = vmatprep.subr.bf16.mxu1 %v666_v38 }
 0x2ec   :  { %2109 = vmatpush3.bf16.msra.mxu1 %v666_v38 }
 0x2ed   :  { %2110 = vmatprep.subr.bf16.mxu1 %v667_v36 }
 0x2f0   :  { %2111 = vmatpush3.bf16.msra.mxu1 %v667_v36 }
 0x2f3   :  { %2113 = vmatmul.mubr.bf16.vlgmr.msra.gmra.mrb[16].mxu1 %v2521_v46 }
 0x2f4   :  { %2116 = vmatprep.mubr.bf16.mxu1 %v2526_v47 }
 0x2fb   :  { %2117 = vmatmul.mubr.bf16.gmra.mrb[20].mxu1 %v2533_v48 }
 0x2fc   :  { %2120 = vmatprep.mubr.bf16.mxu1 %v2538_v49 }
 0x303   :  { %2121 = vmatmul.mubr.bf16.gmra.mrb[24].mxu1 %v2545_v50 }
 0x304   :  { %2124 = vmatprep.mubr.bf16.mxu1 %v2550_v51 }
 0x30b   :  { %2125 = vmatmul.mubr.bf16.gmra.mrb[28].mxu1 %v2557_v52 }
 0x30c   :  { %2176 = vmatprep.mubr.bf16.mxu1 %v2500_v16 }
 0x3c6   :  { %v2114_v43 = vpop.f32.mrb[16].mxu1 }
 0x3c7   :  { %v718_v44 = vadd.f32 %v2114_v43, %v2626_v42  ;;  %v709_v45 = vpop.f32.mrb[17].mxu1 }
 0x3c8   :  { %v710_v53 = vadd.f32 %v2626_v42, %v709_v45  ;;  %v2115_v54 = vpop.f32.mrb[18].mxu1 }
 0x3c9   :  { %v790_v55 = vmul.f32 0.01, %v718_v44  ;;  %v721_v57 = vadd.f32 %v2115_v54, %v2626_v42  ;;  %v712_v58 = vpop.f32.mrb[19].mxu1  ;;  %vm774_vm0 = vcmp.gt.f32.partialorder %v718_v44, 0.0 }
 0x3ca   :  { %v788_v59 = vmul.f32 0.01, %v710_v53  ;;  %v713_v60 = vadd.f32 %v2626_v42, %v712_v58  ;;  %vm772_vm1 = vcmp.gt.f32.partialorder %v710_v53, 0.0 }
 0x3cb   :  { %vm775_vm2 = vcmp.gt.f32.partialorder %v721_v57, 0.0  ;;  %v791_v61 = vmul.f32 0.01, %v721_v57  ;;  %v806_v63 = vsel %vm774_vm0, %v718_v44, %v790_v55 }
 0x3cc   :  { %vm773_vm3 = vcmp.gt.f32.partialorder %v713_v60, 0.0  ;;  %v789_v62 = vmul.f32 0.01, %v713_v60  ;;  %v804_v3 = vsel %vm772_vm1, %v710_v53, %v788_v59 }
 0x3cd   :  { %v807_v0 = vsel %vm775_vm2, %v721_v57, %v791_v61 }
 0x3ce   :  { %v821_v1 = vpack.c.bf16 %v807_v0, %v806_v63  ;;  %v2118_v2 = vpop.f32.mrb[20].mxu1  ;;  %v805_v4 = vsel %vm773_vm3, %v713_v60, %v789_v62 }
 0x3cf   :  { %v734_v5 = vadd.f32 %v2118_v2, %v2626_v42  ;;  %v725_v6 = vpop.f32.mrb[21].mxu1  ;;  %v820_v7 = vpack.c.bf16 %v805_v4, %v804_v3  ;;  %v2360_v4 = vld [vmem:[%s2852_s5] sm:$0xff]  }
 0x3d0   :  { %v726_v8 = vadd.f32 %v2626_v42, %v725_v6  ;;  %v2119_v9 = vpop.f32.mrb[22].mxu1  ;;  %2192 = vmatprep.subr.bf16.mxu0 %v2360_v4  ;;  %v2363_v6 = vld [vmem:[%s2852_s5 + $0x18] sm:$0xff]  }
 0x3d1   :  { %v794_v10 = vmul.f32 0.01, %v734_v5  ;;  %v737_v56 = vadd.f32 %v2119_v9, %v2626_v42  ;;  %v728_v11 = vpop.f32.mrb[23].mxu1  ;;  %2144 = vmatprep.mubr.bf16.mxu0 %v820_v7  ;;  %vm778_vm4 = vcmp.gt.f32.partialorder %v734_v5, 0.0  ;;  %v2364_v7 = vld [vmem:[%s2852_s5 + $0x20] sm:$0xff]  }
 0x3d2   :  { %v792_v12 = vmul.f32 0.01, %v726_v8  ;;  %v729_v13 = vadd.f32 %v2626_v42, %v728_v11  ;;  %2145 = vmatmul.mubr.bf16.vlgmr.msra.gmra.mrb[32].mxu0 %v821_v1  ;;  %vm776_vm5 = vcmp.gt.f32.partialorder %v726_v8, 0.0 }
 0x3d3   :  { %vm779_vm6 = vcmp.gt.f32.partialorder %v737_v56, 0.0  ;;  %v795_v14 = vmul.f32 0.01, %v737_v56  ;;  %v810_v17 = vsel %vm778_vm4, %v734_v5, %v794_v10  ;;  %2193 = vmatpush3.bf16.msra.mxu0 %v2360_v4  ;;  %v2362_v5 = vld [vmem:[%s2852_s5 + $0x10] sm:$0xff]  }
 0x3d4   :  { %vm777_vm7 = vcmp.gt.f32.partialorder %v729_v13, 0.0  ;;  %v793_v15 = vmul.f32 0.01, %v729_v13  ;;  %v808_v20 = vsel %vm776_vm5, %v726_v8, %v792_v12 }
 0x3d5   :  { %v811_v18 = vsel %vm779_vm6, %v737_v56, %v795_v14 }
 0x3d6   :  { %v2122_v19 = vpop.f32.mrb[24].mxu1  ;;  %v809_v21 = vsel %vm777_vm7, %v729_v13, %v793_v15  ;;  %v823_v22 = vpack.c.bf16 %v811_v18, %v810_v17 }
 0x3d7   :  { %v750_v23 = vadd.f32 %v2122_v19, %v2626_v42  ;;  %v741_v24 = vpop.f32.mrb[25].mxu1  ;;  %v822_v25 = vpack.c.bf16 %v809_v21, %v808_v20 }
 0x3d8   :  { %v742_v26 = vadd.f32 %v2626_v42, %v741_v24  ;;  %v2123_v27 = vpop.f32.mrb[26].mxu1 }
 0x3d9   :  { %v798_v28 = vmul.f32 0.01, %v750_v23  ;;  %v753_v29 = vadd.f32 %v2123_v27, %v2626_v42  ;;  %v744_v30 = vpop.f32.mrb[27].mxu1  ;;  %2148 = vmatprep.mubr.bf16.mxu0 %v822_v25  ;;  %vm782_vm8 = vcmp.gt.f32.partialorder %v750_v23, 0.0 }
 0x3da   :  { %v796_v31 = vmul.f32 0.01, %v742_v26  ;;  %v745_v32 = vadd.f32 %v2626_v42, %v744_v30  ;;  %2149 = vmatmul.mubr.bf16.gmra.mrb[36].mxu0 %v823_v22  ;;  %vm780_vm9 = vcmp.gt.f32.partialorder %v742_v26, 0.0 }
 0x3db   :  { %vm783_vm10 = vcmp.gt.f32.partialorder %v753_v29, 0.0  ;;  %v799_v33 = vmul.f32 0.01, %v753_v29  ;;  %v814_v35 = vsel %vm782_vm8, %v750_v23, %v798_v28 }
 0x3dc   :  { %vm781_vm11 = vcmp.gt.f32.partialorder %v745_v32, 0.0  ;;  %v797_v34 = vmul.f32 0.01, %v745_v32  ;;  %v812_v38 = vsel %vm780_vm9, %v742_v26, %v796_v31 }
 0x3dd   :  { %v815_v36 = vsel %vm783_vm10, %v753_v29, %v799_v33 }
 0x3de   :  { %v2126_v37 = vpop.f32.mrb[28].mxu1  ;;  %v813_v39 = vsel %vm781_vm11, %v745_v32, %v797_v34  ;;  %v825_v40 = vpack.c.bf16 %v815_v36, %v814_v35  ;;  %v2365_v32 = vld [vmem:[%s2852_s5 + $0x28] sm:$0xff]  }
 0x3df   :  { %v766_v41 = vadd.f32 %v2126_v37, %v2626_v42  ;;  %v757_v43 = vpop.f32.mrb[29].mxu1  ;;  %v824_v44 = vpack.c.bf16 %v813_v39, %v812_v38 }
 0x3e0   :  { %v758_v45 = vadd.f32 %v2626_v42, %v757_v43  ;;  %v2127_v53 = vpop.f32.mrb[30].mxu1 }
 0x3e1   :  { %v802_v54 = vmul.f32 0.01, %v766_v41  ;;  %v769_v55 = vadd.f32 %v2127_v53, %v2626_v42  ;;  %v760_v57 = vpop.f32.mrb[31].mxu1  ;;  %2152 = vmatprep.mubr.bf16.mxu0 %v824_v44  ;;  %vm786_vm12 = vcmp.gt.f32.partialorder %v766_v41, 0.0 }
 0x3e2   :  { %v800_v58 = vmul.f32 0.01, %v758_v45  ;;  %v761_v59 = vadd.f32 %v2626_v42, %v760_v57  ;;  %2153 = vmatmul.mubr.bf16.gmra.mrb[40].mxu0 %v825_v40  ;;  %vm784_vm13 = vcmp.gt.f32.partialorder %v758_v45, 0.0  ;;  %v2361_v42 = vld [vmem:[%s2852_s5 + $0x8] sm:$0xff]  }
 0x3e3   :  { %vm787_vm14 = vcmp.gt.f32.partialorder %v769_v55, 0.0  ;;  %v803_v60 = vmul.f32 0.01, %v769_v55  ;;  %v818_v62 = vsel %vm786_vm12, %v766_v41, %v802_v54  ;;  %2194 = vmatprep.subr.bf16.mxu0 %v2361_v42 }
 0x3e4   :  { %vm785_vm15 = vcmp.gt.f32.partialorder %v761_v59, 0.0  ;;  %v801_v61 = vmul.f32 0.01, %v761_v59  ;;  %v816_v0 = vsel %vm784_vm13, %v758_v45, %v800_v58  ;;  %2195 = vmatpush3.bf16.msra.mxu0 %v2361_v42 }
 0x3e5   :  { %v819_v63 = vsel %vm787_vm14, %v769_v55, %v803_v60  ;;  %2196 = vmatprep.subr.bf16.mxu0 %v2362_v5 }
 0x3e6   :  { %v817_v1 = vsel %vm785_vm15, %v761_v59, %v801_v61  ;;  %v827_v2 = vpack.c.bf16 %v819_v63, %v818_v62 }
 0x3e7   :  { %v826_v3 = vpack.c.bf16 %v817_v1, %v816_v0 }
 0x3e8   :  { %2197 = vmatpush3.bf16.msra.mxu0 %v2362_v5 }
 0x3e9   :  { %2156 = vmatprep.mubr.bf16.mxu0 %v826_v3  ;;  %2198 = vmatprep.subr.bf16.mxu0 %v2363_v6 }
 0x3ea   :  { %2157 = vmatmul.mubr.bf16.gmra.mrb[44].mxu0 %v827_v2 }
 0x3ec   :  { %2199 = vmatpush3.bf16.msra.mxu0 %v2363_v6 }
 0x3ed   :  { %2200 = vmatprep.subr.bf16.mxu0 %v2364_v7 }
 0x3f0   :  { %2201 = vmatpush3.bf16.msra.mxu0 %v2364_v7 }
 0x3f1   :  { %2202 = vmatprep.subr.bf16.mxu0 %v2365_v32 }
 0x3f4   :  { %2203 = vmatpush3.bf16.msra.mxu0 %v2365_v32 }
 0x4a5   :  { %v2146_v8 = vpop.f32.mrb[32].mxu0 }
 0x4a6   :  { %v926_v9 = vpop.f32.mrb[33].mxu0 }
 0x4a7   :  { %v2147_v10 = vpop.f32.mrb[34].mxu0 }
 0x4a8   :  { %v990_v56 = vpack.c.bf16 %v2147_v10, %v2146_v8  ;;  %v929_v11 = vpop.f32.mrb[35].mxu0 }
 0x4a9   :  { %v989_v12 = vpack.c.bf16 %v929_v11, %v926_v9 }
 0x4ab   :  { %2160 = vmatprep.subr.bf16.mxu1 %v989_v12 }
 0x4ac   :  { %2161 = vmatpush3.bf16.msra.mxu1 %v989_v12 }
 0x4ad   :  { %v2150_v13 = vpop.f32.mrb[36].mxu0  ;;  %2162 = vmatprep.subr.bf16.mxu1 %v990_v56 }
 0x4ae   :  { %v942_v14 = vpop.f32.mrb[37].mxu0 }
 0x4af   :  { %v2151_v15 = vpop.f32.mrb[38].mxu0 }
 0x4b0   :  { %v992_v17 = vpack.c.bf16 %v2151_v15, %v2150_v13  ;;  %v945_v18 = vpop.f32.mrb[39].mxu0  ;;  %2163 = vmatpush3.bf16.msra.mxu1 %v990_v56 }
 0x4b1   :  { %v991_v19 = vpack.c.bf16 %v945_v18, %v942_v14 }
 0x4b3   :  { %2164 = vmatprep.subr.bf16.mxu1 %v991_v19 }
 0x4b4   :  { %2165 = vmatpush3.bf16.msra.mxu1 %v991_v19 }
 0x4b5   :  { %v2154_v20 = vpop.f32.mrb[40].mxu0  ;;  %2166 = vmatprep.subr.bf16.mxu1 %v992_v17 }
 0x4b6   :  { %v958_v21 = vpop.f32.mrb[41].mxu0 }
 0x4b7   :  { %v2155_v22 = vpop.f32.mrb[42].mxu0 }
 0x4b8   :  { %v994_v23 = vpack.c.bf16 %v2155_v22, %v2154_v20  ;;  %v961_v24 = vpop.f32.mrb[43].mxu0  ;;  %2167 = vmatpush3.bf16.msra.mxu1 %v992_v17 }
 0x4b9   :  { %v993_v25 = vpack.c.bf16 %v961_v24, %v958_v21 }
 0x4bb   :  { %2168 = vmatprep.subr.bf16.mxu1 %v993_v25 }
 0x4bc   :  { %2169 = vmatpush3.bf16.msra.mxu1 %v993_v25 }
 0x4bd   :  { %v2158_v26 = vpop.f32.mrb[44].mxu0  ;;  %2170 = vmatprep.subr.bf16.mxu1 %v994_v23 }
 0x4be   :  { %v974_v27 = vpop.f32.mrb[45].mxu0 }
 0x4bf   :  { %v2159_v28 = vpop.f32.mrb[46].mxu0 }
 0x4c0   :  { %v996_v29 = vpack.c.bf16 %v2159_v28, %v2158_v26  ;;  %v977_v30 = vpop.f32.mrb[47].mxu0  ;;  %2171 = vmatpush3.bf16.msra.mxu1 %v994_v23 }
 0x4c1   :  { %v995_v31 = vpack.c.bf16 %v977_v30, %v974_v27 }
 0x4c3   :  { %2172 = vmatprep.subr.bf16.mxu1 %v995_v31 }
 0x4c4   :  { %2173 = vmatpush3.bf16.msra.mxu1 %v995_v31 }
 0x4c5   :  { %2174 = vmatprep.subr.bf16.mxu1 %v996_v29 }
 0x4c8   :  { %2175 = vmatpush3.bf16.msra.mxu1 %v996_v29 }
 0x4cb   :  { %2177 = vmatmul.mubr.bf16.vlgmr.msra.gmra.mrb[32].mxu1 %v2521_v46  ;;  %v2366_v46 = vld [vmem:[%s2852_s5 + $0x30] sm:$0xff]  }
 0x4cc   :  { %2180 = vmatprep.mubr.bf16.mxu1 %v2526_v47  ;;  %2204 = vmatprep.subr.bf16.mxu0 %v2366_v46  ;;  %v2367_v47 = vld [vmem:[%s2852_s5 + $0x38] sm:$0xff]  }
 0x4cd   :  { %2205 = vmatpush3.bf16.msra.mxu0 %v2366_v46 }
 0x4ce   :  { %2206 = vmatprep.subr.bf16.mxu0 %v2367_v47 }
 0x4d1   :  { %2207 = vmatpush3.bf16.msra.mxu0 %v2367_v47 }
 0x4d3   :  { %2181 = vmatmul.mubr.bf16.gmra.mrb[36].mxu1 %v2533_v48 }
 0x4d4   :  { %2184 = vmatprep.mubr.bf16.mxu1 %v2538_v49 }
 0x4db   :  { %2185 = vmatmul.mubr.bf16.gmra.mrb[40].mxu1 %v2545_v50 }
 0x4dc   :  { %2188 = vmatprep.mubr.bf16.mxu1 %v2550_v51 }
 0x4e3   :  { %2189 = vmatmul.mubr.bf16.gmra.mrb[44].mxu1 %v2557_v52 }
 0x4e4   :  { %2240 = vmatprep.mubr.bf16.mxu1 %v2500_v16  ;;  %v2679_v16 = vld [vmem:[%s2853_s9] ss:$0 sm:$0xff] }
 0x59e   :  { %v2178_v48 = vpop.f32.mrb[32].mxu1 }
 0x59f   :  { %v1047_v49 = vadd.f32 %v2178_v48, %v2679_v16  ;;  %v1038_v50 = vpop.f32.mrb[33].mxu1 }
 0x5a0   :  { %v1039_v51 = vadd.f32 %v2679_v16, %v1038_v50  ;;  %v2179_v52 = vpop.f32.mrb[34].mxu1 }
 0x5a1   :  { %v1119_v33 = vmul.f32 0.01, %v1047_v49  ;;  %v1050_v34 = vadd.f32 %v2179_v52, %v2679_v16  ;;  %v1041_v35 = vpop.f32.mrb[35].mxu1  ;;  %vm1103_vm0 = vcmp.gt.f32.partialorder %v1047_v49, 0.0 }
 0x5a2   :  { %v1117_v36 = vmul.f32 0.01, %v1039_v51  ;;  %v1042_v37 = vadd.f32 %v2679_v16, %v1041_v35  ;;  %vm1101_vm1 = vcmp.gt.f32.partialorder %v1039_v51, 0.0 }
 0x5a3   :  { %vm1104_vm2 = vcmp.gt.f32.partialorder %v1050_v34, 0.0  ;;  %v1120_v38 = vmul.f32 0.01, %v1050_v34  ;;  %v1135_v40 = vsel %vm1103_vm0, %v1047_v49, %v1119_v33 }
 0x5a4   :  { %vm1102_vm3 = vcmp.gt.f32.partialorder %v1042_v37, 0.0  ;;  %v1118_v39 = vmul.f32 0.01, %v1042_v37  ;;  %v1133_v45 = vsel %vm1101_vm1, %v1039_v51, %v1117_v36 }
 0x5a5   :  { %v1136_v41 = vsel %vm1104_vm2, %v1050_v34, %v1120_v38  ;;  %v2370_v38 = vld [vmem:[%s2854_s6 + $0x10] sm:$0xff]  }
 0x5a6   :  { %v1150_v43 = vpack.c.bf16 %v1136_v41, %v1135_v40  ;;  %v2182_v44 = vpop.f32.mrb[36].mxu1  ;;  %v1134_v53 = vsel %vm1102_vm3, %v1042_v37, %v1118_v39  ;;  %v2368_v37 = vld [vmem:[%s2854_s6] sm:$0xff]   ;;  %v2371_v39 = vld [vmem:[%s2854_s6 + $0x18] sm:$0xff]  }
 0x5a7   :  { %v1063_v54 = vadd.f32 %v2182_v44, %v2679_v16  ;;  %v1054_v55 = vpop.f32.mrb[37].mxu1  ;;  %v1149_v57 = vpack.c.bf16 %v1134_v53, %v1133_v45  ;;  %2256 = vmatprep.subr.bf16.mxu0 %v2368_v37  ;;  %v2372_v40 = vld [vmem:[%s2854_s6 + $0x20] sm:$0xff]  }
 0x5a8   :  { %v1055_v58 = vadd.f32 %v2679_v16, %v1054_v55  ;;  %v2183_v59 = vpop.f32.mrb[38].mxu1 }
 0x5a9   :  { %v1123_v60 = vmul.f32 0.01, %v1063_v54  ;;  %v1066_v61 = vadd.f32 %v2183_v59, %v2679_v16  ;;  %v1057_v62 = vpop.f32.mrb[39].mxu1  ;;  %2208 = vmatprep.mubr.bf16.mxu0 %v1149_v57  ;;  %vm1107_vm4 = vcmp.gt.f32.partialorder %v1063_v54, 0.0 }
 0x5aa   :  { %v1121_v63 = vmul.f32 0.01, %v1055_v58  ;;  %v1058_v0 = vadd.f32 %v2679_v16, %v1057_v62  ;;  %2209 = vmatmul.mubr.bf16.vlgmr.msra.gmra.mrb[48].mxu0 %v1150_v43  ;;  %vm1105_vm5 = vcmp.gt.f32.partialorder %v1055_v58, 0.0 }
 0x5ab   :  { %vm1108_vm6 = vcmp.gt.f32.partialorder %v1066_v61, 0.0  ;;  %v1124_v1 = vmul.f32 0.01, %v1066_v61  ;;  %v1139_v3 = vsel %vm1107_vm4, %v1063_v54, %v1123_v60  ;;  %2257 = vmatpush3.bf16.msra.mxu0 %v2368_v37 }
 0x5ac   :  { %vm1106_vm7 = vcmp.gt.f32.partialorder %v1058_v0, 0.0  ;;  %v1122_v2 = vmul.f32 0.01, %v1058_v0  ;;  %v1137_v5 = vsel %vm1105_vm5, %v1055_v58, %v1121_v63 }
 0x5ad   :  { %v1140_v4 = vsel %vm1108_vm6, %v1066_v61, %v1124_v1 }
 0x5ae   :  { %v2186_v42 = vpop.f32.mrb[40].mxu1  ;;  %v1138_v6 = vsel %vm1106_vm7, %v1058_v0, %v1122_v2  ;;  %v1152_v7 = vpack.c.bf16 %v1140_v4, %v1139_v3 }
 0x5af   :  { %v1079_v8 = vadd.f32 %v2186_v42, %v2679_v16  ;;  %v1070_v9 = vpop.f32.mrb[41].mxu1  ;;  %v1151_v10 = vpack.c.bf16 %v1138_v6, %v1137_v5 }
 0x5b0   :  { %v1071_v56 = vadd.f32 %v2679_v16, %v1070_v9  ;;  %v2187_v11 = vpop.f32.mrb[42].mxu1  ;;  %v2715_v9 = vld [vmem:[%s2847_s0 + $0x8] sm:$0xff]  }
 0x5b1   :  { %v1127_v12 = vmul.f32 0.01, %v1079_v8  ;;  %v1082_v13 = vadd.f32 %v2187_v11, %v2679_v16  ;;  %v1073_v14 = vpop.f32.mrb[43].mxu1  ;;  %2212 = vmatprep.mubr.bf16.mxu0 %v1151_v10  ;;  %vm1111_vm8 = vcmp.gt.f32.partialorder %v1079_v8, 0.0  ;;  %v2721_v10 = vld [vmem:[%s2847_s0 + $0x10] sm:$0xff]   ;;  %v2733_v11 = vld [vmem:[%s2847_s0 + $0x20] sm:$0xff]  }
 0x5b2   :  { %v1125_v15 = vmul.f32 0.01, %v1071_v56  ;;  %v1074_v17 = vadd.f32 %v2679_v16, %v1073_v14  ;;  %2213 = vmatmul.mubr.bf16.gmra.mrb[52].mxu0 %v1152_v7  ;;  %vm1109_vm9 = vcmp.gt.f32.partialorder %v1071_v56, 0.0  ;;  %v2751_v14 = vld [vmem:[%s2847_s0 + $0x38] sm:$0xff]  }
 0x5b3   :  { %vm1112_vm10 = vcmp.gt.f32.partialorder %v1082_v13, 0.0  ;;  %v1128_v18 = vmul.f32 0.01, %v1082_v13  ;;  %v1143_v20 = vsel %vm1111_vm8, %v1079_v8, %v1127_v12  ;;  %v2739_v12 = vld [vmem:[%s2847_s0 + $0x28] sm:$0xff]  }
 0x5b4   :  { %vm1110_vm11 = vcmp.gt.f32.partialorder %v1074_v17, 0.0  ;;  %v1126_v19 = vmul.f32 0.01, %v1074_v17  ;;  %v1141_v23 = vsel %vm1109_vm9, %v1071_v56, %v1125_v15  ;;  %v2727_v56 = vld [vmem:[%s2847_s0 + $0x18] sm:$0xff]   ;;  %v2383_v15 = vld [vmem:[%s2847_s0] sm:$0xff]  }
 0x5b5   :  { %v1144_v21 = vsel %vm1112_vm10, %v1082_v13, %v1128_v18  ;;  %v2745_v13 = vld [vmem:[%s2847_s0 + $0x30] sm:$0xff]  }
 0x5b6   :  { %v2190_v22 = vpop.f32.mrb[44].mxu1  ;;  %v1142_v24 = vsel %vm1110_vm11, %v1074_v17, %v1126_v19  ;;  %v1154_v25 = vpack.c.bf16 %v1144_v21, %v1143_v20  ;;  %v2373_v17 = vld [vmem:[%s2854_s6 + $0x28] sm:$0xff]   ;;  %v2374_v18 = vld [vmem:[%s2854_s6 + $0x30] sm:$0xff]   ;;  %v2375_v19 = vld [vmem:[%s2854_s6 + $0x38] sm:$0xff]  }
 0x5b7   :  { %v1095_v26 = vadd.f32 %v2190_v22, %v2679_v16  ;;  %v1086_v27 = vpop.f32.mrb[45].mxu1  ;;  %v1153_v28 = vpack.c.bf16 %v1142_v24, %v1141_v23  ;;  %v2769_v20 = vld [vmem:[%s2855_s10] ss:$0 sm:$0xff] }
 0x5b8   :  { %v1087_v29 = vadd.f32 %v2679_v16, %v1086_v27  ;;  %v2191_v30 = vpop.f32.mrb[46].mxu1 }
 0x5b9   :  { %v1131_v31 = vmul.f32 0.01, %v1095_v26  ;;  %v1098_v32 = vadd.f32 %v2191_v30, %v2679_v16  ;;  %v1089_v46 = vpop.f32.mrb[47].mxu1  ;;  %2216 = vmatprep.mubr.bf16.mxu0 %v1153_v28  ;;  %vm1115_vm12 = vcmp.gt.f32.partialorder %v1095_v26, 0.0 }
 0x5ba   :  { %v1129_v47 = vmul.f32 0.01, %v1087_v29  ;;  %v1090_v48 = vadd.f32 %v2679_v16, %v1089_v46  ;;  %2217 = vmatmul.mubr.bf16.gmra.mrb[56].mxu0 %v1154_v25  ;;  %vm1113_vm13 = vcmp.gt.f32.partialorder %v1087_v29, 0.0  ;;  %v2369_v16 = vld [vmem:[%s2854_s6 + $0x8] sm:$0xff]  }
 0x5bb   :  { %vm1116_vm14 = vcmp.gt.f32.partialorder %v1098_v32, 0.0  ;;  %v1132_v49 = vmul.f32 0.01, %v1098_v32  ;;  %v1147_v51 = vsel %vm1115_vm12, %v1095_v26, %v1131_v31  ;;  %2258 = vmatprep.subr.bf16.mxu0 %v2369_v16 }
 0x5bc   :  { %vm1114_vm15 = vcmp.gt.f32.partialorder %v1090_v48, 0.0  ;;  %v1130_v50 = vmul.f32 0.01, %v1090_v48  ;;  %v1145_v33 = vsel %vm1113_vm13, %v1087_v29, %v1129_v47  ;;  %2259 = vmatpush3.bf16.msra.mxu0 %v2369_v16 }
 0x5bd   :  { %v1148_v52 = vsel %vm1116_vm14, %v1098_v32, %v1132_v49  ;;  %2260 = vmatprep.subr.bf16.mxu0 %v2370_v38 }
 0x5be   :  { %v1146_v34 = vsel %vm1114_vm15, %v1090_v48, %v1130_v50  ;;  %v1156_v35 = vpack.c.bf16 %v1148_v52, %v1147_v51 }
 0x5bf   :  { %v1155_v36 = vpack.c.bf16 %v1146_v34, %v1145_v33 }
 0x5c0   :  { %2261 = vmatpush3.bf16.msra.mxu0 %v2370_v38 }
 0x5c1   :  { %2220 = vmatprep.mubr.bf16.mxu0 %v1155_v36  ;;  %2262 = vmatprep.subr.bf16.mxu0 %v2371_v39 }
 0x5c2   :  { %2221 = vmatmul.mubr.bf16.gmra.mrb[60].mxu0 %v1156_v35 }
 0x5c4   :  { %2263 = vmatpush3.bf16.msra.mxu0 %v2371_v39 }
 0x5c5   :  { %2264 = vmatprep.subr.bf16.mxu0 %v2372_v40 }
 0x5c8   :  { %2265 = vmatpush3.bf16.msra.mxu0 %v2372_v40 }
 0x5c9   :  { %2266 = vmatprep.subr.bf16.mxu0 %v2373_v17 }
 0x5cc   :  { %2267 = vmatpush3.bf16.msra.mxu0 %v2373_v17 }
 0x5cd   :  { %2268 = vmatprep.subr.bf16.mxu0 %v2374_v18 }
 0x5d0   :  { %2269 = vmatpush3.bf16.msra.mxu0 %v2374_v18 }
 0x5d1   :  { %2270 = vmatprep.subr.bf16.mxu0 %v2375_v19 }
 0x5d4   :  { %2271 = vmatpush3.bf16.msra.mxu0 %v2375_v19 }
 0x67d   :  { %v2210_v41 = vpop.f32.mrb[48].mxu0 }
 0x67e   :  { %v1255_v43 = vpop.f32.mrb[49].mxu0 }
 0x67f   :  { %v2211_v44 = vpop.f32.mrb[50].mxu0 }
 0x680   :  { %v1319_v45 = vpack.c.bf16 %v2211_v44, %v2210_v41  ;;  %v1258_v53 = vpop.f32.mrb[51].mxu0 }
 0x681   :  { %v1318_v54 = vpack.c.bf16 %v1258_v53, %v1255_v43 }
 0x683   :  { %2224 = vmatprep.subr.bf16.mxu1 %v1318_v54 }
 0x684   :  { %2225 = vmatpush3.bf16.msra.mxu1 %v1318_v54 }
 0x685   :  { %v2214_v55 = vpop.f32.mrb[52].mxu0  ;;  %2226 = vmatprep.subr.bf16.mxu1 %v1319_v45 }
 0x686   :  { %v1271_v57 = vpop.f32.mrb[53].mxu0 }
 0x687   :  { %v2215_v58 = vpop.f32.mrb[54].mxu0 }
 0x688   :  { %v1321_v59 = vpack.c.bf16 %v2215_v58, %v2214_v55  ;;  %v1274_v60 = vpop.f32.mrb[55].mxu0  ;;  %2227 = vmatpush3.bf16.msra.mxu1 %v1319_v45 }
 0x689   :  { %v1320_v61 = vpack.c.bf16 %v1274_v60, %v1271_v57 }
 0x68b   :  { %2228 = vmatprep.subr.bf16.mxu1 %v1320_v61 }
 0x68c   :  { %2229 = vmatpush3.bf16.msra.mxu1 %v1320_v61 }
 0x68d   :  { %v2218_v62 = vpop.f32.mrb[56].mxu0  ;;  %2230 = vmatprep.subr.bf16.mxu1 %v1321_v59 }
 0x68e   :  { %v1287_v63 = vpop.f32.mrb[57].mxu0 }
 0x68f   :  { %v2219_v0 = vpop.f32.mrb[58].mxu0 }
 0x690   :  { %v1323_v1 = vpack.c.bf16 %v2219_v0, %v2218_v62  ;;  %v1290_v2 = vpop.f32.mrb[59].mxu0  ;;  %2231 = vmatpush3.bf16.msra.mxu1 %v1321_v59 }
 0x691   :  { %v1322_v3 = vpack.c.bf16 %v1290_v2, %v1287_v63 }
 0x693   :  { %2232 = vmatprep.subr.bf16.mxu1 %v1322_v3 }
 0x694   :  { %2233 = vmatpush3.bf16.msra.mxu1 %v1322_v3 }
 0x695   :  { %v2222_v4 = vpop.f32.mrb[60].mxu0  ;;  %2234 = vmatprep.subr.bf16.mxu1 %v1323_v1 }
 0x696   :  { %v1303_v42 = vpop.f32.mrb[61].mxu0 }
 0x697   :  { %v2223_v5 = vpop.f32.mrb[62].mxu0 }
 0x698   :  { %v1325_v6 = vpack.c.bf16 %v2223_v5, %v2222_v4  ;;  %v1306_v7 = vpop.f32.mrb[63].mxu0  ;;  %2235 = vmatpush3.bf16.msra.mxu1 %v1323_v1 }
 0x699   :  { %v1324_v8 = vpack.c.bf16 %v1306_v7, %v1303_v42 }
 0x69b   :  { %2236 = vmatprep.subr.bf16.mxu1 %v1324_v8 }
 0x69c   :  { %2237 = vmatpush3.bf16.msra.mxu1 %v1324_v8 }
 0x69d   :  { %2238 = vmatprep.subr.bf16.mxu1 %v1325_v6 }
 0x6a0   :  { %2239 = vmatpush3.bf16.msra.mxu1 %v1325_v6 }
 0x6a3   :  { %2241 = vmatmul.mubr.bf16.vlgmr.msra.gmra.mrb[48].mxu1 %v2715_v9 }
 0x6a4   :  { %2244 = vmatprep.mubr.bf16.mxu1 %v2721_v10 }
 0x6ab   :  { %2245 = vmatmul.mubr.bf16.gmra.mrb[52].mxu1 %v2727_v56 }
 0x6ac   :  { %2248 = vmatprep.mubr.bf16.mxu1 %v2733_v11 }
 0x6b3   :  { %2249 = vmatmul.mubr.bf16.gmra.mrb[56].mxu1 %v2739_v12 }
 0x6b4   :  { %2252 = vmatprep.mubr.bf16.mxu1 %v2745_v13 }
 0x6bb   :  { %2253 = vmatmul.mubr.bf16.gmra.mrb[60].mxu1 %v2751_v14 }
 0x6bc   :  { %2304 = vmatprep.mubr.bf16.mxu1 %v2383_v15 }
 0x776   :  { %v2242_v21 = vpop.f32.mrb[48].mxu1 }
 0x777   :  { %v1376_v22 = vadd.f32 %v2242_v21, %v2769_v20  ;;  %v1367_v23 = vpop.f32.mrb[49].mxu1 }
 0x778   :  { %v1368_v24 = vadd.f32 %v2769_v20, %v1367_v23  ;;  %v2243_v25 = vpop.f32.mrb[50].mxu1 }
 0x779   :  { %v1448_v26 = vmul.f32 0.01, %v1376_v22  ;;  %v1379_v27 = vadd.f32 %v2243_v25, %v2769_v20  ;;  %v1370_v28 = vpop.f32.mrb[51].mxu1  ;;  %vm1432_vm0 = vcmp.gt.f32.partialorder %v1376_v22, 0.0 }
 0x77a   :  { %v1446_v29 = vmul.f32 0.01, %v1368_v24  ;;  %v1371_v30 = vadd.f32 %v2769_v20, %v1370_v28  ;;  %vm1430_vm1 = vcmp.gt.f32.partialorder %v1368_v24, 0.0 }
 0x77b   :  { %vm1433_vm2 = vcmp.gt.f32.partialorder %v1379_v27, 0.0  ;;  %v1449_v31 = vmul.f32 0.01, %v1379_v27  ;;  %v1464_v46 = vsel %vm1432_vm0, %v1376_v22, %v1448_v26 }
 0x77c   :  { %vm1431_vm3 = vcmp.gt.f32.partialorder %v1371_v30, 0.0  ;;  %v1447_v32 = vmul.f32 0.01, %v1371_v30  ;;  %v1462_v50 = vsel %vm1430_vm1, %v1368_v24, %v1446_v29 }
 0x77d   :  { %v1465_v47 = vsel %vm1433_vm2, %v1379_v27, %v1449_v31 }
 0x77e   :  { %v1479_v48 = vpack.c.bf16 %v1465_v47, %v1464_v46  ;;  %v2246_v49 = vpop.f32.mrb[52].mxu1  ;;  %v1463_v51 = vsel %vm1431_vm3, %v1371_v30, %v1447_v32 }
 0x77f   :  { %v1392_v52 = vadd.f32 %v2246_v49, %v2769_v20  ;;  %v1383_v33 = vpop.f32.mrb[53].mxu1  ;;  %v1478_v34 = vpack.c.bf16 %v1463_v51, %v1462_v50 }
 0x780   :  { %v1384_v35 = vadd.f32 %v2769_v20, %v1383_v33  ;;  %v2247_v36 = vpop.f32.mrb[54].mxu1 }
 0x781   :  { %v1452_v37 = vmul.f32 0.01, %v1392_v52  ;;  %v1395_v16 = vadd.f32 %v2247_v36, %v2769_v20  ;;  %v1386_v38 = vpop.f32.mrb[55].mxu1  ;;  %2272 = vmatprep.mubr.bf16.mxu0 %v1478_v34  ;;  %vm1436_vm4 = vcmp.gt.f32.partialorder %v1392_v52, 0.0 }
 0x782   :  { %v1450_v39 = vmul.f32 0.01, %v1384_v35  ;;  %v1387_v40 = vadd.f32 %v2769_v20, %v1386_v38  ;;  %2273 = vmatmul.mubr.bf16.vlgmr.msra.gmra.mrb[64].mxu0 %v1479_v48  ;;  %vm1434_vm5 = vcmp.gt.f32.partialorder %v1384_v35, 0.0 }
 0x783   :  { %vm1437_vm6 = vcmp.gt.f32.partialorder %v1395_v16, 0.0  ;;  %v1453_v41 = vmul.f32 0.01, %v1395_v16  ;;  %v1468_v44 = vsel %vm1436_vm4, %v1392_v52, %v1452_v37 }
 0x784   :  { %vm1435_vm7 = vcmp.gt.f32.partialorder %v1387_v40, 0.0  ;;  %v1451_v43 = vmul.f32 0.01, %v1387_v40  ;;  %v1466_v54 = vsel %vm1434_vm5, %v1384_v35, %v1450_v39 }
 0x785   :  { %v1469_v45 = vsel %vm1437_vm6, %v1395_v16, %v1453_v41 }
 0x786   :  { %v2250_v53 = vpop.f32.mrb[56].mxu1  ;;  %v1467_v55 = vsel %vm1435_vm7, %v1387_v40, %v1451_v43  ;;  %v1481_v57 = vpack.c.bf16 %v1469_v45, %v1468_v44 }
 0x787   :  { %v1408_v58 = vadd.f32 %v2250_v53, %v2769_v20  ;;  %v1399_v59 = vpop.f32.mrb[57].mxu1  ;;  %v1480_v60 = vpack.c.bf16 %v1467_v55, %v1466_v54 }
 0x788   :  { %v1400_v61 = vadd.f32 %v2769_v20, %v1399_v59  ;;  %v2251_v62 = vpop.f32.mrb[58].mxu1 }
 0x789   :  { %v1456_v63 = vmul.f32 0.01, %v1408_v58  ;;  %v1411_v0 = vadd.f32 %v2251_v62, %v2769_v20  ;;  %v1402_v1 = vpop.f32.mrb[59].mxu1  ;;  %2276 = vmatprep.mubr.bf16.mxu0 %v1480_v60  ;;  %vm1440_vm8 = vcmp.gt.f32.partialorder %v1408_v58, 0.0 }
 0x78a   :  { %v1454_v2 = vmul.f32 0.01, %v1400_v61  ;;  %v1403_v3 = vadd.f32 %v2769_v20, %v1402_v1  ;;  %2277 = vmatmul.mubr.bf16.gmra.mrb[68].mxu0 %v1481_v57  ;;  %vm1438_vm9 = vcmp.gt.f32.partialorder %v1400_v61, 0.0 }
 0x78b   :  { %vm1441_vm10 = vcmp.gt.f32.partialorder %v1411_v0, 0.0  ;;  %v1457_v4 = vmul.f32 0.01, %v1411_v0  ;;  %v1472_v5 = vsel %vm1440_vm8, %v1408_v58, %v1456_v63 }
 0x78c   :  { %vm1439_vm11 = vcmp.gt.f32.partialorder %v1403_v3, 0.0  ;;  %v1455_v42 = vmul.f32 0.01, %v1403_v3  ;;  %v1470_v8 = vsel %vm1438_vm9, %v1400_v61, %v1454_v2  ;;  %v1839_v61 = vld [vmem:[%s2856_s11] ss:$0 sm:$0xff] }
 0x78d   :  { %v1473_v6 = vsel %vm1441_vm10, %v1411_v0, %v1457_v4 }
 0x78e   :  { %v2254_v7 = vpop.f32.mrb[60].mxu1  ;;  %v1471_v15 = vsel %vm1439_vm11, %v1403_v3, %v1455_v42  ;;  %v1483_v17 = vpack.c.bf16 %v1473_v6, %v1472_v5 }
 0x78f   :  { %v1424_v18 = vadd.f32 %v2254_v7, %v2769_v20  ;;  %v1415_v19 = vpop.f32.mrb[61].mxu1  ;;  %v1482_v21 = vpack.c.bf16 %v1471_v15, %v1470_v8 }
 0x790   :  { %v1416_v22 = vadd.f32 %v2769_v20, %v1415_v19  ;;  %v2255_v23 = vpop.f32.mrb[62].mxu1 }
 0x791   :  { %v1460_v24 = vmul.f32 0.01, %v1424_v18  ;;  %v1427_v25 = vadd.f32 %v2255_v23, %v2769_v20  ;;  %v1418_v26 = vpop.f32.mrb[63].mxu1  ;;  %2280 = vmatprep.mubr.bf16.mxu0 %v1482_v21  ;;  %vm1444_vm12 = vcmp.gt.f32.partialorder %v1424_v18, 0.0 }
 0x792   :  { %v1458_v27 = vmul.f32 0.01, %v1416_v22  ;;  %v1419_v28 = vadd.f32 %v2769_v20, %v1418_v26  ;;  %2281 = vmatmul.mubr.bf16.gmra.mrb[72].mxu0 %v1483_v17  ;;  %vm1442_vm13 = vcmp.gt.f32.partialorder %v1416_v22, 0.0 }
 0x793   :  { %vm1445_vm14 = vcmp.gt.f32.partialorder %v1427_v25, 0.0  ;;  %v1461_v29 = vmul.f32 0.01, %v1427_v25  ;;  %v1476_v31 = vsel %vm1444_vm12, %v1424_v18, %v1460_v24 }
 0x794   :  { %vm1443_vm15 = vcmp.gt.f32.partialorder %v1419_v28, 0.0  ;;  %v1459_v30 = vmul.f32 0.01, %v1419_v28  ;;  %v1474_v46 = vsel %vm1442_vm13, %v1416_v22, %v1458_v27 }
 0x795   :  { %v1477_v32 = vsel %vm1445_vm14, %v1427_v25, %v1461_v29 }
 0x796   :  { %v1475_v47 = vsel %vm1443_vm15, %v1419_v28, %v1459_v30  ;;  %v1485_v48 = vpack.c.bf16 %v1477_v32, %v1476_v31 }
 0x797   :  { %v1484_v49 = vpack.c.bf16 %v1475_v47, %v1474_v46 }
 0x799   :  { %2284 = vmatprep.mubr.bf16.mxu0 %v1484_v49 }
 0x79a   :  { %2285 = vmatmul.mubr.bf16.gmra.mrb[76].mxu0 %v1485_v48 }
 0x855   :  { %v2274_v50 = vpop.f32.mrb[64].mxu0 }
 0x856   :  { %v1584_v51 = vpop.f32.mrb[65].mxu0 }
 0x857   :  { %v2275_v52 = vpop.f32.mrb[66].mxu0 }
 0x858   :  { %v1648_v33 = vpack.c.bf16 %v2275_v52, %v2274_v50  ;;  %v1587_v34 = vpop.f32.mrb[67].mxu0 }
 0x859   :  { %v1647_v20 = vpack.c.bf16 %v1587_v34, %v1584_v51 }
 0x85b   :  { %2288 = vmatprep.subr.bf16.mxu1 %v1647_v20 }
 0x85c   :  { %2289 = vmatpush3.bf16.msra.mxu1 %v1647_v20 }
 0x85d   :  { %v2278_v35 = vpop.f32.mrb[68].mxu0  ;;  %2290 = vmatprep.subr.bf16.mxu1 %v1648_v33 }
 0x85e   :  { %v1600_v36 = vpop.f32.mrb[69].mxu0 }
 0x85f   :  { %v2279_v37 = vpop.f32.mrb[70].mxu0 }
 0x860   :  { %v1650_v16 = vpack.c.bf16 %v2279_v37, %v2278_v35  ;;  %v1603_v38 = vpop.f32.mrb[71].mxu0  ;;  %2291 = vmatpush3.bf16.msra.mxu1 %v1648_v33 }
 0x861   :  { %v1649_v39 = vpack.c.bf16 %v1603_v38, %v1600_v36 }
 0x863   :  { %2292 = vmatprep.subr.bf16.mxu1 %v1649_v39 }
 0x864   :  { %2293 = vmatpush3.bf16.msra.mxu1 %v1649_v39 }
 0x865   :  { %v2282_v40 = vpop.f32.mrb[72].mxu0  ;;  %2294 = vmatprep.subr.bf16.mxu1 %v1650_v16 }
 0x866   :  { %v1616_v41 = vpop.f32.mrb[73].mxu0 }
 0x867   :  { %v2283_v43 = vpop.f32.mrb[74].mxu0 }
 0x868   :  { %v1652_v44 = vpack.c.bf16 %v2283_v43, %v2282_v40  ;;  %v1619_v45 = vpop.f32.mrb[75].mxu0  ;;  %2295 = vmatpush3.bf16.msra.mxu1 %v1650_v16 }
 0x869   :  { %v1651_v53 = vpack.c.bf16 %v1619_v45, %v1616_v41 }
 0x86b   :  { %2296 = vmatprep.subr.bf16.mxu1 %v1651_v53 }
 0x86c   :  { %2297 = vmatpush3.bf16.msra.mxu1 %v1651_v53 }
 0x86d   :  { %v2286_v54 = vpop.f32.mrb[76].mxu0  ;;  %2298 = vmatprep.subr.bf16.mxu1 %v1652_v44 }
 0x86e   :  { %v1632_v55 = vpop.f32.mrb[77].mxu0 }
 0x86f   :  { %v2287_v57 = vpop.f32.mrb[78].mxu0 }
 0x870   :  { %v1654_v58 = vpack.c.bf16 %v2287_v57, %v2286_v54  ;;  %v1635_v59 = vpop.f32.mrb[79].mxu0  ;;  %2299 = vmatpush3.bf16.msra.mxu1 %v1652_v44 }
 0x871   :  { %v1653_v60 = vpack.c.bf16 %v1635_v59, %v1632_v55 }
 0x873   :  { %2300 = vmatprep.subr.bf16.mxu1 %v1653_v60 }
 0x874   :  { %2301 = vmatpush3.bf16.msra.mxu1 %v1653_v60 }
 0x875   :  { %2302 = vmatprep.subr.bf16.mxu1 %v1654_v58 }
 0x878   :  { %2303 = vmatpush3.bf16.msra.mxu1 %v1654_v58 }
 0x87b   :  { %2305 = vmatmul.mubr.bf16.vlgmr.msra.gmra.mrb[64].mxu1 %v2715_v9 }
 0x87c   :  { %2308 = vmatprep.mubr.bf16.mxu1 %v2721_v10 }
 0x883   :  { %2309 = vmatmul.mubr.bf16.gmra.mrb[68].mxu1 %v2727_v56 }
 0x884   :  { %2312 = vmatprep.mubr.bf16.mxu1 %v2733_v11 }
 0x88b   :  { %2313 = vmatmul.mubr.bf16.gmra.mrb[72].mxu1 %v2739_v12 }
 0x88c   :  { %2316 = vmatprep.mubr.bf16.mxu1 %v2745_v13 }
 0x893   :  { %2317 = vmatmul.mubr.bf16.gmra.mrb[76].mxu1 %v2751_v14 }
 0x94e   :  { %v2306_v62 = vpop.f32.mrb[64].mxu1 }
 0x94f   :  { %v1705_v63 = vadd.f32 %v2306_v62, %v1839_v61  ;;  %v1696_v0 = vpop.f32.mrb[65].mxu1 }
 0x950   :  { %v1697_v9 = vadd.f32 %v1839_v61, %v1696_v0  ;;  %v2307_v1 = vpop.f32.mrb[66].mxu1 }
 0x951   :  { %1761 = vst [vmem:[%s2857_s12 + $0x10] sm:$0xff] %v1705_v63  ;;  %v1708_v10 = vadd.f32 %v2307_v1, %v1839_v61  ;;  %v1699_v56 = vpop.f32.mrb[67].mxu1 }
 0x952   :  { %1759 = vst [vmem:[%s2857_s12] sm:$0xff] %v1697_v9  ;;  %v1700_v11 = vadd.f32 %v1839_v61, %v1699_v56 }
 0x953   :  { %1762 = vst [vmem:[%s2857_s12 + $0x18] sm:$0xff] %v1708_v10 }
 0x954   :  { %1760 = vst [vmem:[%s2857_s12 + $0x8] sm:$0xff] %v1700_v11 }
 0x956   :  { %v2310_v12 = vpop.f32.mrb[68].mxu1 }
 0x957   :  { %v1721_v13 = vadd.f32 %v2310_v12, %v1839_v61  ;;  %v1712_v14 = vpop.f32.mrb[69].mxu1 }
 0x958   :  { %v1713_v2 = vadd.f32 %v1839_v61, %v1712_v14  ;;  %v2311_v3 = vpop.f32.mrb[70].mxu1 }
 0x959   :  { %1765 = vst [vmem:[%s2857_s12 + $0x30] sm:$0xff] %v1721_v13  ;;  %v1724_v4 = vadd.f32 %v2311_v3, %v1839_v61  ;;  %v1715_v42 = vpop.f32.mrb[71].mxu1 }
 0x95a   :  { %1763 = vst [vmem:[%s2857_s12 + $0x20] sm:$0xff] %v1713_v2  ;;  %v1716_v5 = vadd.f32 %v1839_v61, %v1715_v42 }
 0x95b   :  { %1766 = vst [vmem:[%s2857_s12 + $0x38] sm:$0xff] %v1724_v4 }
 0x95c   :  { %1764 = vst [vmem:[%s2857_s12 + $0x28] sm:$0xff] %v1716_v5 }
 0x95e   :  { %v2314_v6 = vpop.f32.mrb[72].mxu1 }
 0x95f   :  { %v1737_v7 = vadd.f32 %v2314_v6, %v1839_v61  ;;  %v1728_v8 = vpop.f32.mrb[73].mxu1 }
 0x960   :  { %v1729_v15 = vadd.f32 %v1839_v61, %v1728_v8  ;;  %v2315_v17 = vpop.f32.mrb[74].mxu1 }
 0x961   :  { %1769 = vst [vmem:[%s2857_s12 + $0x50] sm:$0xff] %v1737_v7  ;;  %v1740_v18 = vadd.f32 %v2315_v17, %v1839_v61  ;;  %v1731_v19 = vpop.f32.mrb[75].mxu1 }
 0x962   :  { %1767 = vst [vmem:[%s2857_s12 + $0x40] sm:$0xff] %v1729_v15  ;;  %v1732_v21 = vadd.f32 %v1839_v61, %v1731_v19 }
 0x963   :  { %1770 = vst [vmem:[%s2857_s12 + $0x58] sm:$0xff] %v1740_v18 }
 0x964   :  { %1768 = vst [vmem:[%s2857_s12 + $0x48] sm:$0xff] %v1732_v21 }
 0x966   :  { %v2318_v22 = vpop.f32.mrb[76].mxu1 }
 0x967   :  { %v1753_v23 = vadd.f32 %v2318_v22, %v1839_v61  ;;  %v1744_v24 = vpop.f32.mrb[77].mxu1 }
 0x968   :  { %v1745_v25 = vadd.f32 %v1839_v61, %v1744_v24  ;;  %v2319_v26 = vpop.f32.mrb[78].mxu1 }
 0x969   :  { %1773 = vst [vmem:[%s2857_s12 + $0x70] sm:$0xff] %v1753_v23  ;;  %v1756_v27 = vadd.f32 %v2319_v26, %v1839_v61  ;;  %v1747_v28 = vpop.f32.mrb[79].mxu1 }
 0x96a   :  { %1771 = vst [vmem:[%s2857_s12 + $0x60] sm:$0xff] %v1745_v25  ;;  %v1748_v29 = vadd.f32 %v1839_v61, %v1747_v28 }
 0x96b   :  { %1774 = vst [vmem:[%s2857_s12 + $0x78] sm:$0xff] %v1756_v27 }
 0x96c   :  { %1772 = vst [vmem:[%s2857_s12 + $0x68] sm:$0xff] %v1748_v29 }

</bundles_post_ra>
